<compile_context>
chip_gen: v6e
topology: v6e:2x2x1
jax: 0.10.0
libtpu: 0.0.40
codegen_flags: <defaults>
</compile_context>

<pallas_src>
import numpy as np

import jax
import jax.numpy as jnp
from jax.experimental import pallas as pl
from jax.experimental.pallas import tpu as pltpu

NEG_SLOPE = 0.1


# ----------------------------------------------------------------------------
# The fused Pallas kernel
# ----------------------------------------------------------------------------
def cifar_fused_kernel(x_ref, w1_ref, b1_ref, b2_ref, bf1_ref, bf2_ref, bf3_ref,
                       w2_hbm, wf1_hbm, wf2_hbm, wf3_hbm,
                       o_ref,
                       w2_buf, wf1_buf, wf2_buf, wf3_buf, dma_sems):
    # --- kick off later-stage weight DMAs so they hide under conv compute ---
    cp_w2 = pltpu.make_async_copy(w2_hbm, w2_buf, dma_sems.at[0])
    cp_wf1 = pltpu.make_async_copy(wf1_hbm, wf1_buf, dma_sems.at[1])
    cp_wf2 = pltpu.make_async_copy(wf2_hbm, wf2_buf, dma_sems.at[2])
    cp_wf3 = pltpu.make_async_copy(wf3_hbm, wf3_buf, dma_sems.at[3])
    cp_w2.start()
    cp_wf1.start()
    cp_wf2.start()
    cp_wf3.start()

    def dot(a, b):
        # bf16 operands on the MXU, f32 accumulation (weights already bf16).
        return jnp.dot(a.astype(jnp.bfloat16), b,
                       preferred_element_type=jnp.float32)

    def lrelu(v):
        return jnp.where(v >= 0, v, NEG_SLOPE * v)

    X = x_ref[...]                      # (4N, 512) f32: rows=(n, y//4), lanes=(y%4, x, c)
    N = X.shape[0] // 4

    # ------------------------------------------------------------------------
    # Stage 1: Conv2d(3,32,3) + MaxPool2d(2) + LeakyReLU.
    # One MXU matmul.  LHS rows = (dy-offset p, ph1 parity, sample n, ph1//2),
    # LHS lanes = (ky, x, c_in) -> contraction K = 3*128 = 384.
    # Weight columns = (dx, pw1, c_out) with each dx block padded to 256 lanes.
    # All row/lane selections are contiguous, 128-aligned slices of X.
    # ------------------------------------------------------------------------
    slabs = [[], [], [], []]
    for n in range(N):
        A = X[4 * n:4 * n + 4, :]                                    # (4, 512)
        slabs[0].append(A[0:3, 0:384])                               # even ph1, p=0
        slabs[1].append(A[0:3, 128:512])                             # even ph1, p=1
        slabs[2].append(jnp.concatenate(                             # odd  ph1, p=0
            [A[0:3, 256:512], A[1:4, 0:128]], axis=1))
        slabs[3].append(jnp.concatenate(                             # odd  ph1, p=1
            [A[0:3, 384:512], A[1:4, 0:256]], axis=1))
    L1 = jnp.concatenate([s for grp in slabs for s in grp], axis=0)  # (12N, 384)
    Z1 = dot(L1, w1_ref[...])                                        # (12N, 512)

    R = 3 * N
    m_e = jnp.maximum(Z1[0:R], Z1[R:2 * R])                 # dy max, even ph1
    m_o = jnp.maximum(Z1[2 * R:3 * R], Z1[3 * R:4 * R])     # dy max, odd  ph1
    m_e = jnp.maximum(m_e[:, 0:256], m_e[:, 256:512])       # dx max (128-aligned halves)
    m_o = jnp.maximum(m_o[:, 0:256], m_o[:, 256:512])
    y1e = lrelu(m_e + b1_ref[...])                          # bias/lrelu commute with max
    y1o = lrelu(m_o + b1_ref[...])
    # Stage-2 input: rows=(n, ph1//2), lanes=(ph1%2, pw1, c1) -> (3N, 512)
    y1 = jnp.concatenate([y1e, y1o], axis=1)

    # ------------------------------------------------------------------------
    # Stage 2: Conv2d(32,64,3) + MaxPool2d(2) + LeakyReLU.  One MXU matmul,
    # K = 3*256 = 768, output lanes = (dx2, pw2, c2) = 256 exactly.
    # ------------------------------------------------------------------------
    q = [[], []]
    for n in range(N):
        C = y1[3 * n:3 * n + 3, :]                                   # (3, 512)
        q[0].append(jnp.concatenate([C[0:2, 0:512], C[1:3, 0:256]], axis=1))   # p2=0
        q[1].append(jnp.concatenate([C[0:2, 256:512], C[1:3, 0:512]], axis=1)) # p2=1
    L2 = jnp.concatenate(q[0] + q[1], axis=0)                        # (4N, 768)

    cp_w2.wait()
    Z2 = dot(L2, w2_buf[...])                                        # (4N, 256)
    m2 = jnp.maximum(Z2[0:2 * N], Z2[2 * N:4 * N])                   # dy max
    m2 = jnp.maximum(m2[:, 0:128], m2[:, 128:256])                   # dx max
    y2 = lrelu(m2 + b2_ref[...])                                     # (2N, 128): rows=(n, ph2)

    # ------------------------------------------------------------------------
    # Flatten (torch NCHW view(N,-1) permutation is baked into wf1's rows) and
    # the 3-layer MLP head.  Flatten = lane concat of the two ph2 rows; no
    # selector matmuls.  Rows padded to 8 for a dense (8,128) output store.
    # ------------------------------------------------------------------------
    feats = [jnp.concatenate([y2[2 * n:2 * n + 1, :],
                              y2[2 * n + 1:2 * n + 2, :]], axis=1)
             for n in range(N)]
    if N < 8:
        feats.append(jnp.zeros((8 - N, 256), jnp.float32))
    F = jnp.concatenate(feats, axis=0)                               # (8, 256)

    cp_wf1.wait()
    h = lrelu(dot(F, wf1_buf[...]) + bf1_ref[...])                   # (8, 256)
    cp_wf2.wait()
    h = lrelu(dot(h, wf2_buf[...]) + bf2_ref[...])                   # (8, 128)
    cp_wf3.wait()
    o_ref[...] = dot(h, wf3_buf[...]) + bf3_ref[...]                 # dense (8, 128) store


# ----------------------------------------------------------------------------
# Parameter packing (runs once, plain numpy).  All packed tensors are
# batch-independent; conv weights are Toeplitz-packed with ky folded into the
# contraction rows, and stored in bf16.
# ----------------------------------------------------------------------------
def prepare_params(params):
    w1 = np.asarray(params["w_conv1"], np.float32)   # (3,3,3,32)  HWIO
    b1 = np.asarray(params["b_conv1"], np.float32)
    w2 = np.asarray(params["w_conv2"], np.float32)   # (3,3,32,64) HWIO
    b2 = np.asarray(params["b_conv2"], np.float32)
    wf1 = np.asarray(params["w_fc1"], np.float32)    # (256,256) (in,out), torch-order rows
    bf1 = np.asarray(params["b_fc1"], np.float32)
    wf2 = np.asarray(params["w_fc2"], np.float32)    # (256,128)
    bf2 = np.asarray(params["b_fc2"], np.float32)
    wf3 = np.asarray(params["w_fc3"], np.float32)    # (128,4)
    bf3 = np.asarray(params["b_fc3"], np.float32)

    # Stage-1 weight: rows = ky*128 + (x*3 + c_in); cols = dx*256 + pw1*32 + c_out
    w1s = np.zeros((384, 512), np.float32)
    for ky in range(3):
        for kx in range(3):
            for pw in range(6):
                for dx in range(2):
                    x = 2 * pw + dx + kx
                    r = ky * 128 + x * 3
                    col = dx * 256 + pw * 32
                    w1s[r:r + 3, col:col + 32] = w1[ky, kx]
    b1_t = np.zeros((1, 256), np.float32)
    b1_t[0, :192] = np.tile(b1, 6)                   # lanes = pw1*32 + c_out, pad lanes 0

    # Stage-2 weight: rows = ky*256 + (pw1*32 + c1); cols = dx2*128 + pw2*64 + c2
    w2s = np.zeros((768, 256), np.float32)
    for ky in range(3):
        for kx in range(3):
            for pw2 in range(2):
                for dx2 in range(2):
                    pw1 = 2 * pw2 + dx2 + kx
                    r = ky * 256 + pw1 * 32
                    col = dx2 * 128 + pw2 * 64
                    w2s[r:r + 32, col:col + 64] = w2[ky, kx]
    b2_t = np.tile(b2, 2).reshape(1, 128).astype(np.float32)

    # fc1: bake the PyTorch NCHW view(N,-1) permutation into the weight rows.
    # our feature lane = ph2*128 + pw2*64 + c ;  torch index = c*4 + ph2*2 + pw2
    idx = np.arange(256)
    ph2, rem = idx // 128, idx % 128
    pw2, c = rem // 64, rem % 64
    wf1_p = wf1[c * 4 + ph2 * 2 + pw2, :]

    # fc3 padded to 128 output lanes -> unmasked lane-dense final store.
    wf3_p = np.zeros((128, 128), np.float32)
    wf3_p[:, :4] = wf3
    bf3_p = np.zeros((1, 128), np.float32)
    bf3_p[0, :4] = bf3

    bf16 = jnp.bfloat16
    return dict(
        w1=jnp.asarray(w1s, bf16), b1=jnp.asarray(b1_t),
        w2=jnp.asarray(w2s, bf16), b2=jnp.asarray(b2_t),
        wf1=jnp.asarray(wf1_p, bf16), bf1=jnp.asarray(bf1.reshape(1, 256)),
        wf2=jnp.asarray(wf2, bf16), bf2=jnp.asarray(bf2.reshape(1, 128)),
        wf3=jnp.asarray(wf3_p, bf16), bf3=jnp.asarray(bf3_p))


# ----------------------------------------------------------------------------
# Forward pass: one pallas_call, everything VMEM-resident.
# ----------------------------------------------------------------------------
def cifar_cnn_forward(x_nchw, prep):
    n = x_nchw.shape[0]
    assert n <= 8 and x_nchw.shape[1:] == (3, 14, 14)
    # Layout glue only: NCHW -> rows=(n, y//4), lanes=(y%4)*128 + (x*3 + c),
    # zero-padded to a dense (4N, 512) tile.
    x = jnp.transpose(x_nchw, (0, 2, 3, 1)).reshape(n, 14, 42)
    x = jnp.pad(x, ((0, 0), (0, 2), (0, 128 - 42)))          # (n, 16, 128)
    x_mat = x.reshape(n * 4, 512)

    vmem = pl.BlockSpec(memory_space=pltpu.MemorySpace.VMEM)
    anyspace = pl.BlockSpec(memory_space=pl.ANY)

    # NOTE: at batch <= a few samples a grid-less call is best; for large
    # batches add a leading "parallel" grid axis over samples (engages the
    # second TensorCore on v7x).
    out = pl.pallas_call(
        cifar_fused_kernel,
        out_shape=jax.ShapeDtypeStruct((8, 128), jnp.float32),
        in_specs=[vmem] * 7 + [anyspace] * 4,
        out_specs=vmem,
        scratch_shapes=[
            pltpu.VMEM((768, 256), jnp.bfloat16),   # w2 double-buffer target
            pltpu.VMEM((256, 256), jnp.bfloat16),   # fc1
            pltpu.VMEM((256, 128), jnp.bfloat16),   # fc2
            pltpu.VMEM((128, 128), jnp.bfloat16),   # fc3
            pltpu.SemaphoreType.DMA((4,)),
        ],
        cost_estimate=pl.CostEstimate(flops=14_400_000, transcendentals=0,
                                      bytes_accessed=1_050_000),
    )(x_mat, prep["w1"], prep["b1"], prep["b2"], prep["bf1"], prep["bf2"],
      prep["bf3"], prep["w2"], prep["wf1"], prep["wf2"], prep["wf3"])
    return out[:n, :4]


# ----------------------------------------------------------------------------
# Deterministic parameter init (synthetic weights; shapes from the module)
# ----------------------------------------------------------------------------
def init_params(key):
    ks = jax.random.split(key, 10)
    s = 0.1
    return {
        # conv weights in HWIO layout (== torch OIHW transposed (2,3,1,0))
        "w_conv1": s * jax.random.normal(ks[0], (3, 3, 3, 32), jnp.float32),
        "b_conv1": s * jax.random.normal(ks[1], (32,), jnp.float32),
        "w_conv2": s * jax.random.normal(ks[2], (3, 3, 32, 64), jnp.float32),
        "b_conv2": s * jax.random.normal(ks[3], (64,), jnp.float32),
        # linear weights stored as (in, out), rows in torch view(N,-1) order
        "w_fc1": s * jax.random.normal(ks[4], (256, 256), jnp.float32),
        "b_fc1": s * jax.random.normal(ks[5], (256,), jnp.float32),
        "w_fc2": s * jax.random.normal(ks[6], (256, 128), jnp.float32),
        "b_fc2": s * jax.random.normal(ks[7], (128,), jnp.float32),
        "w_fc3": s * jax.random.normal(ks[8], (128, 4), jnp.float32),
        "b_fc3": s * jax.random.normal(ks[9], (4,), jnp.float32),
    }


# ----------------------------------------------------------------------------
# Pure-JAX reference (PyTorch module semantics, f32) for the correctness check
# ----------------------------------------------------------------------------
def _leaky(x):
    return jnp.where(x >= 0, x, NEG_SLOPE * x)


def reference_forward(x_nchw, p):
    x = jnp.transpose(x_nchw, (0, 2, 3, 1))
    for w, b in ((p["w_conv1"], p["b_conv1"]), (p["w_conv2"], p["b_conv2"])):
        x = jax.lax.conv_general_dilated(
            x, w, window_strides=(1, 1), padding="VALID",
            dimension_numbers=("NHWC", "HWIO", "NHWC")) + b
        n, h, w_, c = x.shape
        x = x.reshape(n, h // 2, 2, w_ // 2, 2, c).max(axis=(2, 4))
        x = _leaky(x)
    x = jnp.transpose(x, (0, 3, 1, 2)).reshape(x.shape[0], -1)   # torch view order
    x = _leaky(x @ p["w_fc1"] + p["b_fc1"])
    x = _leaky(x @ p["w_fc2"] + p["b_fc2"])
    return x @ p["w_fc3"] + p["b_fc3"]


if __name__ == "__main__":
    key = jax.random.PRNGKey(0)
    k_x, k_p = jax.random.split(key)

    # (N, C, H, W) = (2, 3, 14, 14) -> conv path yields 2x2x64 = 256 features
    x = jax.random.normal(k_x, (2, 3, 14, 14), jnp.float32)
    params = init_params(k_p)
    prep = prepare_params(params)

    out = jax.jit(cifar_cnn_forward)(x, prep)
    out = jax.block_until_ready(out)
    assert out.shape == (2, 4), out.shape

    ref = jax.block_until_ready(reference_forward(x, params))
    # bf16 MXU operands (per perf review) -> compare at 5e-2 instead of 1e-3.
    assert jnp.allclose(out, ref, atol=5e-2, rtol=5e-2), (out, ref)

    print("KERNEL_OK")
</pallas_src>

<mosaic_0001>
module attributes {stable_mosaic.version = 11 : i64} {
  func.func @cifar_fused_kernel(%arg0: memref<8x512xf32, #tpu.memory_space<vmem>>, %arg1: memref<384x512xbf16, #tpu.memory_space<vmem>>, %arg2: memref<1x256xf32, #tpu.memory_space<vmem>>, %arg3: memref<1x128xf32, #tpu.memory_space<vmem>>, %arg4: memref<1x256xf32, #tpu.memory_space<vmem>>, %arg5: memref<1x128xf32, #tpu.memory_space<vmem>>, %arg6: memref<1x128xf32, #tpu.memory_space<vmem>>, %arg7: memref<768x256xbf16, #tpu.memory_space<any>>, %arg8: memref<256x256xbf16, #tpu.memory_space<any>>, %arg9: memref<256x128xbf16, #tpu.memory_space<any>>, %arg10: memref<128x128xbf16, #tpu.memory_space<any>>, %arg11: memref<8x128xf32, #tpu.memory_space<vmem>>, %arg12: memref<768x256xbf16, #tpu.memory_space<vmem>>, %arg13: memref<256x256xbf16, #tpu.memory_space<vmem>>, %arg14: memref<256x128xbf16, #tpu.memory_space<vmem>>, %arg15: memref<128x128xbf16, #tpu.memory_space<vmem>>, %arg16: memref<4x!tpu.dma_semaphore, #tpu.memory_space<semaphore_mem>>) attributes {dimension_semantics = [], scalar_prefetch = 0 : i64, scratch_operands = 5 : i64, tpu.core_type = #tpu.core_type<tc>} {
    %c0_i32 = arith.constant 0 : i32
    %0 = tpu.memref_slice %arg16[%c0_i32] : memref<4x!tpu.dma_semaphore, #tpu.memory_space<semaphore_mem>> -> memref<1x!tpu.dma_semaphore, #tpu.memory_space<semaphore_mem>>
    %1 = tpu.memref_squeeze %0 : memref<1x!tpu.dma_semaphore, #tpu.memory_space<semaphore_mem>> -> memref<!tpu.dma_semaphore, #tpu.memory_space<semaphore_mem>>
    tpu.enqueue_dma source(%arg7 : memref<768x256xbf16, #tpu.memory_space<any>>) target(%arg12 : memref<768x256xbf16, #tpu.memory_space<vmem>>) target_semaphore(%1 : memref<!tpu.dma_semaphore, #tpu.memory_space<semaphore_mem>>)
    %c1_i32 = arith.constant 1 : i32
    %2 = tpu.memref_slice %arg16[%c1_i32] : memref<4x!tpu.dma_semaphore, #tpu.memory_space<semaphore_mem>> -> memref<1x!tpu.dma_semaphore, #tpu.memory_space<semaphore_mem>>
    %3 = tpu.memref_squeeze %2 : memref<1x!tpu.dma_semaphore, #tpu.memory_space<semaphore_mem>> -> memref<!tpu.dma_semaphore, #tpu.memory_space<semaphore_mem>>
    tpu.enqueue_dma source(%arg8 : memref<256x256xbf16, #tpu.memory_space<any>>) target(%arg13 : memref<256x256xbf16, #tpu.memory_space<vmem>>) target_semaphore(%3 : memref<!tpu.dma_semaphore, #tpu.memory_space<semaphore_mem>>)
    %c2_i32 = arith.constant 2 : i32
    %4 = tpu.memref_slice %arg16[%c2_i32] : memref<4x!tpu.dma_semaphore, #tpu.memory_space<semaphore_mem>> -> memref<1x!tpu.dma_semaphore, #tpu.memory_space<semaphore_mem>>
    %5 = tpu.memref_squeeze %4 : memref<1x!tpu.dma_semaphore, #tpu.memory_space<semaphore_mem>> -> memref<!tpu.dma_semaphore, #tpu.memory_space<semaphore_mem>>
    tpu.enqueue_dma source(%arg9 : memref<256x128xbf16, #tpu.memory_space<any>>) target(%arg14 : memref<256x128xbf16, #tpu.memory_space<vmem>>) target_semaphore(%5 : memref<!tpu.dma_semaphore, #tpu.memory_space<semaphore_mem>>)
    %c3_i32 = arith.constant 3 : i32
    %6 = tpu.memref_slice %arg16[%c3_i32] : memref<4x!tpu.dma_semaphore, #tpu.memory_space<semaphore_mem>> -> memref<1x!tpu.dma_semaphore, #tpu.memory_space<semaphore_mem>>
    %7 = tpu.memref_squeeze %6 : memref<1x!tpu.dma_semaphore, #tpu.memory_space<semaphore_mem>> -> memref<!tpu.dma_semaphore, #tpu.memory_space<semaphore_mem>>
    tpu.enqueue_dma source(%arg10 : memref<128x128xbf16, #tpu.memory_space<any>>) target(%arg15 : memref<128x128xbf16, #tpu.memory_space<vmem>>) target_semaphore(%7 : memref<!tpu.dma_semaphore, #tpu.memory_space<semaphore_mem>>)
    %c0 = arith.constant 0 : index
    %c0_0 = arith.constant 0 : index
    %8 = vector.load %arg0[%c0, %c0_0] : memref<8x512xf32, #tpu.memory_space<vmem>>, vector<8x512xf32>
    %9 = vector.extract_strided_slice %8 {offsets = [0, 0], sizes = [4, 512], strides = [1, 1]} : vector<8x512xf32> to vector<4x512xf32>
    %10 = vector.extract_strided_slice %9 {offsets = [0, 0], sizes = [3, 384], strides = [1, 1]} : vector<4x512xf32> to vector<3x384xf32>
    %11 = vector.extract_strided_slice %9 {offsets = [0, 128], sizes = [3, 384], strides = [1, 1]} : vector<4x512xf32> to vector<3x384xf32>
    %12 = vector.extract_strided_slice %9 {offsets = [0, 256], sizes = [3, 256], strides = [1, 1]} : vector<4x512xf32> to vector<3x256xf32>
    %13 = vector.extract_strided_slice %9 {offsets = [1, 0], sizes = [3, 128], strides = [1, 1]} : vector<4x512xf32> to vector<3x128xf32>
    %14 = tpu.concatenate %12, %13 in 1 : vector<3x256xf32>, vector<3x128xf32> -> vector<3x384xf32>
    %15 = vector.extract_strided_slice %9 {offsets = [0, 384], sizes = [3, 128], strides = [1, 1]} : vector<4x512xf32> to vector<3x128xf32>
    %16 = vector.extract_strided_slice %9 {offsets = [1, 0], sizes = [3, 256], strides = [1, 1]} : vector<4x512xf32> to vector<3x256xf32>
    %17 = tpu.concatenate %15, %16 in 1 : vector<3x128xf32>, vector<3x256xf32> -> vector<3x384xf32>
    %18 = vector.extract_strided_slice %8 {offsets = [4, 0], sizes = [4, 512], strides = [1, 1]} : vector<8x512xf32> to vector<4x512xf32>
    %19 = vector.extract_strided_slice %18 {offsets = [0, 0], sizes = [3, 384], strides = [1, 1]} : vector<4x512xf32> to vector<3x384xf32>
    %20 = vector.extract_strided_slice %18 {offsets = [0, 128], sizes = [3, 384], strides = [1, 1]} : vector<4x512xf32> to vector<3x384xf32>
    %21 = vector.extract_strided_slice %18 {offsets = [0, 256], sizes = [3, 256], strides = [1, 1]} : vector<4x512xf32> to vector<3x256xf32>
    %22 = vector.extract_strided_slice %18 {offsets = [1, 0], sizes = [3, 128], strides = [1, 1]} : vector<4x512xf32> to vector<3x128xf32>
    %23 = tpu.concatenate %21, %22 in 1 : vector<3x256xf32>, vector<3x128xf32> -> vector<3x384xf32>
    %24 = vector.extract_strided_slice %18 {offsets = [0, 384], sizes = [3, 128], strides = [1, 1]} : vector<4x512xf32> to vector<3x128xf32>
    %25 = vector.extract_strided_slice %18 {offsets = [1, 0], sizes = [3, 256], strides = [1, 1]} : vector<4x512xf32> to vector<3x256xf32>
    %26 = tpu.concatenate %24, %25 in 1 : vector<3x128xf32>, vector<3x256xf32> -> vector<3x384xf32>
    %27 = tpu.concatenate %10, %19, %11, %20, %14, %23, %17, %26 in 0 : vector<3x384xf32>, vector<3x384xf32>, vector<3x384xf32>, vector<3x384xf32>, vector<3x384xf32>, vector<3x384xf32>, vector<3x384xf32>, vector<3x384xf32> -> vector<24x384xf32>
    %c0_1 = arith.constant 0 : index
    %c0_2 = arith.constant 0 : index
    %28 = vector.load %arg1[%c0_1, %c0_2] : memref<384x512xbf16, #tpu.memory_space<vmem>>, vector<384x512xbf16>
    %29 = arith.truncf %27 : vector<24x384xf32> to vector<24x384xbf16>
    %cst = arith.constant dense<0.000000e+00> : vector<24x512xf32>
    %30 = tpu.matmul %29, %28, %cst {dimension_numbers = #tpu.dot_dimension_numbers<[1], [0], [0], [1], [0, 0, 1, 1], [], []>} : vector<24x384xbf16>, vector<384x512xbf16>, vector<24x512xf32> -> vector<24x512xf32>
    %31 = vector.extract_strided_slice %30 {offsets = [0, 0], sizes = [6, 512], strides = [1, 1]} : vector<24x512xf32> to vector<6x512xf32>
    %32 = vector.extract_strided_slice %30 {offsets = [6, 0], sizes = [6, 512], strides = [1, 1]} : vector<24x512xf32> to vector<6x512xf32>
    %33 = arith.maximumf %31, %32 : vector<6x512xf32>
    %34 = vector.extract_strided_slice %30 {offsets = [12, 0], sizes = [6, 512], strides = [1, 1]} : vector<24x512xf32> to vector<6x512xf32>
    %35 = vector.extract_strided_slice %30 {offsets = [18, 0], sizes = [6, 512], strides = [1, 1]} : vector<24x512xf32> to vector<6x512xf32>
    %36 = arith.maximumf %34, %35 : vector<6x512xf32>
    %37 = vector.extract_strided_slice %33 {offsets = [0, 0], sizes = [6, 256], strides = [1, 1]} : vector<6x512xf32> to vector<6x256xf32>
    %38 = vector.extract_strided_slice %33 {offsets = [0, 256], sizes = [6, 256], strides = [1, 1]} : vector<6x512xf32> to vector<6x256xf32>
    %39 = arith.maximumf %37, %38 : vector<6x256xf32>
    %40 = vector.extract_strided_slice %36 {offsets = [0, 0], sizes = [6, 256], strides = [1, 1]} : vector<6x512xf32> to vector<6x256xf32>
    %41 = vector.extract_strided_slice %36 {offsets = [0, 256], sizes = [6, 256], strides = [1, 1]} : vector<6x512xf32> to vector<6x256xf32>
    %42 = arith.maximumf %40, %41 : vector<6x256xf32>
    %c0_3 = arith.constant 0 : index
    %c0_4 = arith.constant 0 : index
    %43 = vector.load %arg2[%c0_3, %c0_4] : memref<1x256xf32, #tpu.memory_space<vmem>>, vector<1x256xf32>
    %44 = vector.broadcast %43 : vector<1x256xf32> to vector<6x256xf32>
    %45 = arith.addf %39, %44 : vector<6x256xf32>
    %cst_5 = arith.constant 0.000000e+00 : f32
    %46 = vector.broadcast %cst_5 : f32 to vector<6x256xf32>
    %47 = arith.cmpf oge, %45, %46 : vector<6x256xf32>
    %cst_6 = arith.constant 1.000000e-01 : f32
    %48 = vector.broadcast %cst_6 : f32 to vector<6x256xf32>
    %49 = arith.mulf %48, %45 : vector<6x256xf32>
    %50 = arith.select %47, %45, %49 : vector<6x256xi1>, vector<6x256xf32>
    %c0_7 = arith.constant 0 : index
    %c0_8 = arith.constant 0 : index
    %51 = vector.load %arg2[%c0_7, %c0_8] : memref<1x256xf32, #tpu.memory_space<vmem>>, vector<1x256xf32>
    %52 = vector.broadcast %51 : vector<1x256xf32> to vector<6x256xf32>
    %53 = arith.addf %42, %52 : vector<6x256xf32>
    %cst_9 = arith.constant 0.000000e+00 : f32
    %54 = vector.broadcast %cst_9 : f32 to vector<6x256xf32>
    %55 = arith.cmpf oge, %53, %54 : vector<6x256xf32>
    %cst_10 = arith.constant 1.000000e-01 : f32
    %56 = vector.broadcast %cst_10 : f32 to vector<6x256xf32>
    %57 = arith.mulf %56, %53 : vector<6x256xf32>
    %58 = arith.select %55, %53, %57 : vector<6x256xi1>, vector<6x256xf32>
    %59 = tpu.concatenate %50, %58 in 1 : vector<6x256xf32>, vector<6x256xf32> -> vector<6x512xf32>
    %60 = vector.extract_strided_slice %59 {offsets = [0, 0], sizes = [3, 512], strides = [1, 1]} : vector<6x512xf32> to vector<3x512xf32>
    %61 = vector.extract_strided_slice %60 {offsets = [0, 0], sizes = [2, 512], strides = [1, 1]} : vector<3x512xf32> to vector<2x512xf32>
    %62 = vector.extract_strided_slice %60 {offsets = [1, 0], sizes = [2, 256], strides = [1, 1]} : vector<3x512xf32> to vector<2x256xf32>
    %63 = tpu.concatenate %61, %62 in 1 : vector<2x512xf32>, vector<2x256xf32> -> vector<2x768xf32>
    %64 = vector.extract_strided_slice %60 {offsets = [0, 256], sizes = [2, 256], strides = [1, 1]} : vector<3x512xf32> to vector<2x256xf32>
    %65 = vector.extract_strided_slice %60 {offsets = [1, 0], sizes = [2, 512], strides = [1, 1]} : vector<3x512xf32> to vector<2x512xf32>
    %66 = tpu.concatenate %64, %65 in 1 : vector<2x256xf32>, vector<2x512xf32> -> vector<2x768xf32>
    %67 = vector.extract_strided_slice %59 {offsets = [3, 0], sizes = [3, 512], strides = [1, 1]} : vector<6x512xf32> to vector<3x512xf32>
    %68 = vector.extract_strided_slice %67 {offsets = [0, 0], sizes = [2, 512], strides = [1, 1]} : vector<3x512xf32> to vector<2x512xf32>
    %69 = vector.extract_strided_slice %67 {offsets = [1, 0], sizes = [2, 256], strides = [1, 1]} : vector<3x512xf32> to vector<2x256xf32>
    %70 = tpu.concatenate %68, %69 in 1 : vector<2x512xf32>, vector<2x256xf32> -> vector<2x768xf32>
    %71 = vector.extract_strided_slice %67 {offsets = [0, 256], sizes = [2, 256], strides = [1, 1]} : vector<3x512xf32> to vector<2x256xf32>
    %72 = vector.extract_strided_slice %67 {offsets = [1, 0], sizes = [2, 512], strides = [1, 1]} : vector<3x512xf32> to vector<2x512xf32>
    %73 = tpu.concatenate %71, %72 in 1 : vector<2x256xf32>, vector<2x512xf32> -> vector<2x768xf32>
    %74 = tpu.concatenate %63, %70, %66, %73 in 0 : vector<2x768xf32>, vector<2x768xf32>, vector<2x768xf32>, vector<2x768xf32> -> vector<8x768xf32>
    %c0_i32_11 = arith.constant 0 : i32
    %75 = tpu.memref_slice %arg16[%c0_i32_11] : memref<4x!tpu.dma_semaphore, #tpu.memory_space<semaphore_mem>> -> memref<1x!tpu.dma_semaphore, #tpu.memory_space<semaphore_mem>>
    %76 = tpu.memref_squeeze %75 : memref<1x!tpu.dma_semaphore, #tpu.memory_space<semaphore_mem>> -> memref<!tpu.dma_semaphore, #tpu.memory_space<semaphore_mem>>
    tpu.wait_dma2 semaphore(%76 : memref<!tpu.dma_semaphore, #tpu.memory_space<semaphore_mem>>) src(%arg7 : memref<768x256xbf16, #tpu.memory_space<any>>) dst(%arg12 : memref<768x256xbf16, #tpu.memory_space<vmem>>)
    %c0_12 = arith.constant 0 : index
    %c0_13 = arith.constant 0 : index
    %77 = vector.load %arg12[%c0_12, %c0_13] : memref<768x256xbf16, #tpu.memory_space<vmem>>, vector<768x256xbf16>
    %78 = arith.truncf %74 : vector<8x768xf32> to vector<8x768xbf16>
    %cst_14 = arith.constant dense<0.000000e+00> : vector<8x256xf32>
    %79 = tpu.matmul %78, %77, %cst_14 {dimension_numbers = #tpu.dot_dimension_numbers<[1], [0], [0], [1], [0, 0, 1, 1], [], []>} : vector<8x768xbf16>, vector<768x256xbf16>, vector<8x256xf32> -> vector<8x256xf32>
    %80 = vector.extract_strided_slice %79 {offsets = [0, 0], sizes = [4, 256], strides = [1, 1]} : vector<8x256xf32> to vector<4x256xf32>
    %81 = vector.extract_strided_slice %79 {offsets = [4, 0], sizes = [4, 256], strides = [1, 1]} : vector<8x256xf32> to vector<4x256xf32>
    %82 = arith.maximumf %80, %81 : vector<4x256xf32>
    %83 = vector.extract_strided_slice %82 {offsets = [0, 0], sizes = [4, 128], strides = [1, 1]} : vector<4x256xf32> to vector<4x128xf32>
    %84 = vector.extract_strided_slice %82 {offsets = [0, 128], sizes = [4, 128], strides = [1, 1]} : vector<4x256xf32> to vector<4x128xf32>
    %85 = arith.maximumf %83, %84 : vector<4x128xf32>
    %c0_15 = arith.constant 0 : index
    %c0_16 = arith.constant 0 : index
    %86 = vector.load %arg3[%c0_15, %c0_16] : memref<1x128xf32, #tpu.memory_space<vmem>>, vector<1x128xf32>
    %87 = vector.broadcast %86 : vector<1x128xf32> to vector<4x128xf32>
    %88 = arith.addf %85, %87 : vector<4x128xf32>
    %cst_17 = arith.constant 0.000000e+00 : f32
    %89 = vector.broadcast %cst_17 : f32 to vector<4x128xf32>
    %90 = arith.cmpf oge, %88, %89 : vector<4x128xf32>
    %cst_18 = arith.constant 1.000000e-01 : f32
    %91 = vector.broadcast %cst_18 : f32 to vector<4x128xf32>
    %92 = arith.mulf %91, %88 : vector<4x128xf32>
    %93 = arith.select %90, %88, %92 : vector<4x128xi1>, vector<4x128xf32>
    %94 = vector.extract_strided_slice %93 {offsets = [0, 0], sizes = [1, 128], strides = [1, 1]} : vector<4x128xf32> to vector<1x128xf32>
    %95 = vector.extract_strided_slice %93 {offsets = [1, 0], sizes = [1, 128], strides = [1, 1]} : vector<4x128xf32> to vector<1x128xf32>
    %96 = tpu.concatenate %94, %95 in 1 : vector<1x128xf32>, vector<1x128xf32> -> vector<1x256xf32>
    %97 = vector.extract_strided_slice %93 {offsets = [2, 0], sizes = [1, 128], strides = [1, 1]} : vector<4x128xf32> to vector<1x128xf32>
    %98 = vector.extract_strided_slice %93 {offsets = [3, 0], sizes = [1, 128], strides = [1, 1]} : vector<4x128xf32> to vector<1x128xf32>
    %99 = tpu.concatenate %97, %98 in 1 : vector<1x128xf32>, vector<1x128xf32> -> vector<1x256xf32>
    %cst_19 = arith.constant 0.000000e+00 : f32
    %100 = vector.broadcast %cst_19 : f32 to vector<6x256xf32>
    %101 = tpu.concatenate %96, %99, %100 in 0 : vector<1x256xf32>, vector<1x256xf32>, vector<6x256xf32> -> vector<8x256xf32>
    %c1_i32_20 = arith.constant 1 : i32
    %102 = tpu.memref_slice %arg16[%c1_i32_20] : memref<4x!tpu.dma_semaphore, #tpu.memory_space<semaphore_mem>> -> memref<1x!tpu.dma_semaphore, #tpu.memory_space<semaphore_mem>>
    %103 = tpu.memref_squeeze %102 : memref<1x!tpu.dma_semaphore, #tpu.memory_space<semaphore_mem>> -> memref<!tpu.dma_semaphore, #tpu.memory_space<semaphore_mem>>
    tpu.wait_dma2 semaphore(%103 : memref<!tpu.dma_semaphore, #tpu.memory_space<semaphore_mem>>) src(%arg8 : memref<256x256xbf16, #tpu.memory_space<any>>) dst(%arg13 : memref<256x256xbf16, #tpu.memory_space<vmem>>)
    %c0_21 = arith.constant 0 : index
    %c0_22 = arith.constant 0 : index
    %104 = vector.load %arg13[%c0_21, %c0_22] : memref<256x256xbf16, #tpu.memory_space<vmem>>, vector<256x256xbf16>
    %105 = arith.truncf %101 : vector<8x256xf32> to vector<8x256xbf16>
    %cst_23 = arith.constant dense<0.000000e+00> : vector<8x256xf32>
    %106 = tpu.matmul %105, %104, %cst_23 {dimension_numbers = #tpu.dot_dimension_numbers<[1], [0], [0], [1], [0, 0, 1, 1], [], []>} : vector<8x256xbf16>, vector<256x256xbf16>, vector<8x256xf32> -> vector<8x256xf32>
    %c0_24 = arith.constant 0 : index
    %c0_25 = arith.constant 0 : index
    %107 = vector.load %arg4[%c0_24, %c0_25] : memref<1x256xf32, #tpu.memory_space<vmem>>, vector<1x256xf32>
    %108 = vector.broadcast %107 : vector<1x256xf32> to vector<8x256xf32>
    %109 = arith.addf %106, %108 : vector<8x256xf32>
    %cst_26 = arith.constant 0.000000e+00 : f32
    %110 = vector.broadcast %cst_26 : f32 to vector<8x256xf32>
    %111 = arith.cmpf oge, %109, %110 : vector<8x256xf32>
    %cst_27 = arith.constant 1.000000e-01 : f32
    %112 = vector.broadcast %cst_27 : f32 to vector<8x256xf32>
    %113 = arith.mulf %112, %109 : vector<8x256xf32>
    %114 = arith.select %111, %109, %113 : vector<8x256xi1>, vector<8x256xf32>
    %c2_i32_28 = arith.constant 2 : i32
    %115 = tpu.memref_slice %arg16[%c2_i32_28] : memref<4x!tpu.dma_semaphore, #tpu.memory_space<semaphore_mem>> -> memref<1x!tpu.dma_semaphore, #tpu.memory_space<semaphore_mem>>
    %116 = tpu.memref_squeeze %115 : memref<1x!tpu.dma_semaphore, #tpu.memory_space<semaphore_mem>> -> memref<!tpu.dma_semaphore, #tpu.memory_space<semaphore_mem>>
    tpu.wait_dma2 semaphore(%116 : memref<!tpu.dma_semaphore, #tpu.memory_space<semaphore_mem>>) src(%arg9 : memref<256x128xbf16, #tpu.memory_space<any>>) dst(%arg14 : memref<256x128xbf16, #tpu.memory_space<vmem>>)
    %c0_29 = arith.constant 0 : index
    %c0_30 = arith.constant 0 : index
    %117 = vector.load %arg14[%c0_29, %c0_30] : memref<256x128xbf16, #tpu.memory_space<vmem>>, vector<256x128xbf16>
    %118 = arith.truncf %114 : vector<8x256xf32> to vector<8x256xbf16>
    %cst_31 = arith.constant dense<0.000000e+00> : vector<8x128xf32>
    %119 = tpu.matmul %118, %117, %cst_31 {dimension_numbers = #tpu.dot_dimension_numbers<[1], [0], [0], [1], [0, 0, 1, 1], [], []>} : vector<8x256xbf16>, vector<256x128xbf16>, vector<8x128xf32> -> vector<8x128xf32>
    %c0_32 = arith.constant 0 : index
    %c0_33 = arith.constant 0 : index
    %120 = vector.load %arg5[%c0_32, %c0_33] : memref<1x128xf32, #tpu.memory_space<vmem>>, vector<1x128xf32>
    %121 = vector.broadcast %120 : vector<1x128xf32> to vector<8x128xf32>
    %122 = arith.addf %119, %121 : vector<8x128xf32>
    %cst_34 = arith.constant 0.000000e+00 : f32
    %123 = vector.broadcast %cst_34 : f32 to vector<8x128xf32>
    %124 = arith.cmpf oge, %122, %123 : vector<8x128xf32>
    %cst_35 = arith.constant 1.000000e-01 : f32
    %125 = vector.broadcast %cst_35 : f32 to vector<8x128xf32>
    %126 = arith.mulf %125, %122 : vector<8x128xf32>
    %127 = arith.select %124, %122, %126 : vector<8x128xi1>, vector<8x128xf32>
    %c3_i32_36 = arith.constant 3 : i32
    %128 = tpu.memref_slice %arg16[%c3_i32_36] : memref<4x!tpu.dma_semaphore, #tpu.memory_space<semaphore_mem>> -> memref<1x!tpu.dma_semaphore, #tpu.memory_space<semaphore_mem>>
    %129 = tpu.memref_squeeze %128 : memref<1x!tpu.dma_semaphore, #tpu.memory_space<semaphore_mem>> -> memref<!tpu.dma_semaphore, #tpu.memory_space<semaphore_mem>>
    tpu.wait_dma2 semaphore(%129 : memref<!tpu.dma_semaphore, #tpu.memory_space<semaphore_mem>>) src(%arg10 : memref<128x128xbf16, #tpu.memory_space<any>>) dst(%arg15 : memref<128x128xbf16, #tpu.memory_space<vmem>>)
    %c0_37 = arith.constant 0 : index
    %c0_38 = arith.constant 0 : index
    %130 = vector.load %arg15[%c0_37, %c0_38] : memref<128x128xbf16, #tpu.memory_space<vmem>>, vector<128x128xbf16>
    %131 = arith.truncf %127 : vector<8x128xf32> to vector<8x128xbf16>
    %cst_39 = arith.constant dense<0.000000e+00> : vector<8x128xf32>
    %132 = tpu.matmul %131, %130, %cst_39 {dimension_numbers = #tpu.dot_dimension_numbers<[1], [0], [0], [1], [0, 0, 1, 1], [], []>} : vector<8x128xbf16>, vector<128x128xbf16>, vector<8x128xf32> -> vector<8x128xf32>
    %c0_40 = arith.constant 0 : index
    %c0_41 = arith.constant 0 : index
    %133 = vector.load %arg6[%c0_40, %c0_41] : memref<1x128xf32, #tpu.memory_space<vmem>>, vector<1x128xf32>
    %134 = vector.broadcast %133 : vector<1x128xf32> to vector<8x128xf32>
    %135 = arith.addf %132, %134 : vector<8x128xf32>
    %c0_42 = arith.constant 0 : index
    %c0_43 = arith.constant 0 : index
    %136 = vector.load %arg11[%c0_42, %c0_43] : memref<8x128xf32, #tpu.memory_space<vmem>>, vector<8x128xf32>
    tpu.vector_store %arg11[%c0_42, %c0_43], %135 {strides = array<i32>} : memref<8x128xf32, #tpu.memory_space<vmem>>, vector<8x128xf32>,
    return
  }
}

</mosaic_0001>

<bundles_post_ra>
// kernel: cifar_cnn_forward.1
= control target key start
LH: loop header
LB: loop body
LE: loop exit
PB: predicated region body
PF: predicated region fallthrough
CT: control target
= control target key end

     0   :  { %16 = vsyncpa [#allocation8], 0  ;;  %s3315_s17 = smov [#allocation7]   ;;  %s3838_s0 = inlined_call_operand.vmem [shape: f32[8,512], index: 0, kind: input, shape index: {}]   ;;  %s3839_s1 = inlined_call_operand.hbm [shape: bf16[384,512], index: 1, kind: input, shape index: {}]   ;;  %s3840_s2 = inlined_call_operand.vmem [shape: f32[1,256], index: 2, kind: input, shape index: {}]   ;;  %s3841_s3 = inlined_call_operand.vmem [shape: f32[1,128], index: 3, kind: input, shape index: {}]   ;;  %s3842_s4 = inlined_call_operand.vmem [shape: f32[1,256], index: 4, kind: input, shape index: {}]   ;;  %s3843_s5 = inlined_call_operand.vmem [shape: f32[1,128], index: 5, kind: input, shape index: {}]   ;;  %s3844_s6 = inlined_call_operand.vmem [shape: f32[1,128], index: 6, kind: input, shape index: {}]   ;;  %s3845_s7 = inlined_call_operand.hbm [shape: bf16[768,256], index: 7, kind: input, shape index: {}]   ;;  %s3846_s8 = inlined_call_operand.vmem [shape: bf16[256,256], index: 8, kind: input, shape index: {}]   ;;  %s3847_s9 = inlined_call_operand.vmem [shape: bf16[256,128], index: 9, kind: input, shape index: {}]   ;;  %s3848_s10 = inlined_call_operand.hbm [shape: bf16[128,128], index: 10, kind: input, shape index: {}]   ;;  %s3849_s11 = inlined_call_operand.vmem [shape: f32[8,128], index: 11, kind: output, shape index: {}]  }
   0x1   :  { %s24_s18 = sshll.u32 %s3315_s17, 4  ;;  %s25_s18 = int_to_ptr.vmem [resolvable:$true] %s24_s18 }
   0x2   :  { %s3253_s19 = scalar_lea.vmem %s25_s18, 12288  ;;  %p3258_p1 = scmp.lt.s32.totalorder %s25_s18, %s25_s18 }
   0x3   :  { %p3254_p0 = scmp.ne.s32.totalorder %s25_s18, %s3253_s19  ;;  %p3259_p2 = scmp.lt.s32.totalorder %s3253_s19, %s3253_s19 }
   0x5   :  { %p3260_p3 = por %p3259_p2, %p3258_p1 }
   0x7   :  { %p3261_p4 = pnand %p3260_p3, %p3254_p0 }
   0x9   :  { %3264 = shalt.err (!%p3261_p4)
}
   0xa   :  { %s3316_s20 = smov 256   ;;  %s3317_s21 = smov 16  }
   0xb   :  { %30 = dma.hbm_to_vmem [thread:$0]  %s3839_s1, 12288, %s25_s18, [#allocation8], %s3316_s20, %s3316_s20, %s3317_s21  }
   0xc   :  { %3305 = dma.done.wait [#allocation8], 12288  }
   0xd   :  { %3306 = vsyncadd [#allocation8], 4294955008  ;;  %s3318_s24 = smov [#allocation2]  }
   0xe   :  { %s52_s25 = sshll.u32 %s3318_s24, 4  ;;  %s53_s25 = int_to_ptr.vmem [resolvable:$true] %s52_s25 }
   0xf   :  { %s3273_s26 = scalar_lea.vmem %s53_s25, 12288  ;;  %p3278_p6 = scmp.lt.s32.totalorder %s53_s25, %s53_s25 }
  0x10   :  { %p3274_p5 = scmp.ne.s32.totalorder %s53_s25, %s3273_s26  ;;  %p3279_p7 = scmp.lt.s32.totalorder %s3273_s26, %s3273_s26 }
  0x12   :  { %p3280_p8 = por %p3279_p7, %p3278_p6 }
  0x14   :  { %p3281_p9 = pnand %p3280_p8, %p3274_p5 }
  0x16   :  { %3284 = shalt.err (!%p3281_p9)  }
  0x17   :  { %55 = dma.hbm_to_vmem [thread:$0]  %s3845_s7, 12288, %s53_s25, [#allocation6]  ;;  %v3392_v0 = vld [vmem:[%s3846_s8] sm:$0xff]  ;;  %v3397_v1 = vld [vmem:[%s3846_s8 + $0x8] sm:$0xff]  ;;  %v3402_v2 = vld [vmem:[%s3846_s8 + $0x10] sm:$0xff] }
  0x18   :  { %v3407_v3 = vld [vmem:[%s3846_s8 + $0x18] sm:$0xff]  ;;  %v3412_v4 = vld [vmem:[%s3846_s8 + $0x20] sm:$0xff]  ;;  %v3417_v5 = vld [vmem:[%s3846_s8 + $0x28] sm:$0xff] }
  0x19   :  { %v3422_v6 = vld [vmem:[%s3846_s8 + $0x30] sm:$0xff]  ;;  %v3427_v7 = vld [vmem:[%s3846_s8 + $0x38] sm:$0xff]  ;;  %v3432_v8 = vld [vmem:[%s3846_s8 + $0x40] sm:$0xff] }
  0x1a   :  { %v3437_v9 = vld [vmem:[%s3846_s8 + $0x48] sm:$0xff]  ;;  %v3442_v10 = vld [vmem:[%s3846_s8 + $0x50] sm:$0xff]  ;;  %v3447_v11 = vld [vmem:[%s3846_s8 + $0x58] sm:$0xff] }
  0x1b   :  { %v3452_v12 = vld [vmem:[%s3846_s8 + $0x60] sm:$0xff]  ;;  %v3457_v13 = vld [vmem:[%s3846_s8 + $0x68] sm:$0xff]  ;;  %v3462_v14 = vld [vmem:[%s3846_s8 + $0x70] sm:$0xff] }
  0x1c   :  { %v3467_v15 = vld [vmem:[%s3846_s8 + $0x78] sm:$0xff]  ;;  %v3472_v16 = vld [vmem:[%s3846_s8 + $0x80] sm:$0xff]  ;;  %v3477_v17 = vld [vmem:[%s3846_s8 + $0x88] sm:$0xff] }
  0x1d   :  { %3861 = vst [vmem:[#allocation22_spill] sm:$0xff] %v3472_v16  ;;  %3862 = vst [vmem:[#allocation23_spill] sm:$0xff] %v3477_v17  ;;  %v3482_v18 = vld [vmem:[%s3846_s8 + $0x90] sm:$0xff]  ;;  %v3487_v19 = vld [vmem:[%s3846_s8 + $0x98] sm:$0xff] }
  0x1e   :  { %3863 = vst [vmem:[#allocation24_spill] sm:$0xff] %v3482_v18  ;;  %3864 = vst [vmem:[#allocation25_spill] sm:$0xff] %v3487_v19  ;;  %v3492_v20 = vld [vmem:[%s3846_s8 + $0xa0] sm:$0xff]  ;;  %v3497_v21 = vld [vmem:[%s3846_s8 + $0xa8] sm:$0xff] }
  0x1f   :  { %3865 = vst [vmem:[#allocation26_spill] sm:$0xff] %v3492_v20  ;;  %3866 = vst [vmem:[#allocation27_spill] sm:$0xff] %v3497_v21  ;;  %v3502_v22 = vld [vmem:[%s3846_s8 + $0xb0] sm:$0xff]  ;;  %v3507_v23 = vld [vmem:[%s3846_s8 + $0xb8] sm:$0xff] }
  0x20   :  { %3867 = vst [vmem:[#allocation28_spill] sm:$0xff] %v3502_v22  ;;  %3868 = vst [vmem:[#allocation29_spill] sm:$0xff] %v3507_v23  ;;  %v3512_v24 = vld [vmem:[%s3846_s8 + $0xc0] sm:$0xff]  ;;  %v3517_v25 = vld [vmem:[%s3846_s8 + $0xc8] sm:$0xff] }
  0x21   :  { %v3522_v26 = vld [vmem:[%s3846_s8 + $0xd0] sm:$0xff]  ;;  %v3527_v27 = vld [vmem:[%s3846_s8 + $0xd8] sm:$0xff]  ;;  %v3532_v28 = vld [vmem:[%s3846_s8 + $0xe0] sm:$0xff] }
  0x22   :  { %v3537_v29 = vld [vmem:[%s3846_s8 + $0xe8] sm:$0xff]  ;;  %v3542_v30 = vld [vmem:[%s3846_s8 + $0xf0] sm:$0xff]  ;;  %v3547_v31 = vld [vmem:[%s3846_s8 + $0xf8] sm:$0xff] }
  0x23   :  { %161 = vsyncadd [#allocation6 + $0x1], 4096  ;;  %v196_v32 = vld [vmem:[%s3847_s9] sm:$0xff]  ;;  %v198_v33 = vld [vmem:[%s3847_s9 + $0x8] sm:$0xff]  ;;  %v3319_v50 = vmov 0   ;;  %vm298_vm0 = vcmask 1042432  }
  0x24   :  { %197 = vst [vmem:[#allocation4] sm:$0xff] %v196_v32  ;;  %199 = vst [vmem:[#allocation4 + $0x8] sm:$0xff] %v198_v33  ;;  %v200_v34 = vld [vmem:[%s3847_s9 + $0x10] sm:$0xff]  ;;  %v202_v35 = vld [vmem:[%s3847_s9 + $0x18] sm:$0xff]  ;;  %991 = vmatprep.mubr.bf16.mxu1 %v3319_v50  ;;  %vm302_vm1 = vcmask 1045504   ;;  %vm306_vm2 = vcmask 1040384  }
  0x25   :  { %v204_v36 = vld [vmem:[%s3847_s9 + $0x20] sm:$0xff]  ;;  %201 = vst [vmem:[#allocation4 + $0x10] sm:$0xff] %v200_v34  ;;  %203 = vst [vmem:[#allocation4 + $0x18] sm:$0xff] %v202_v35  ;;  %v206_v37 = vld [vmem:[%s3847_s9 + $0x28] sm:$0xff]  ;;  %vm310_vm3 = vcmask 1043456   ;;  %vm314_vm4 = vcmask 1046528  }
  0x26   :  { %205 = vst [vmem:[#allocation4 + $0x20] sm:$0xff] %v204_v36  ;;  %v208_v38 = vld [vmem:[%s3847_s9 + $0x30] sm:$0xff]  ;;  %v210_v39 = vld [vmem:[%s3847_s9 + $0x38] sm:$0xff]  ;;  %207 = vst [vmem:[#allocation4 + $0x28] sm:$0xff] %v206_v37  ;;  %vm318_vm5 = vcmask 1041408   ;;  %vm322_vm6 = vcmask 1044480  }
  0x27   :  { %209 = vst [vmem:[#allocation4 + $0x30] sm:$0xff] %v208_v38  ;;  %211 = vst [vmem:[#allocation4 + $0x38] sm:$0xff] %v210_v39  ;;  %v212_v40 = vld [vmem:[%s3847_s9 + $0x40] sm:$0xff]  ;;  %v214_v41 = vld [vmem:[%s3847_s9 + $0x48] sm:$0xff] }
  0x28   :  { %v216_v42 = vld [vmem:[%s3847_s9 + $0x50] sm:$0xff]  ;;  %213 = vst [vmem:[#allocation4 + $0x40] sm:$0xff] %v212_v40  ;;  %215 = vst [vmem:[#allocation4 + $0x48] sm:$0xff] %v214_v41  ;;  %v218_v43 = vld [vmem:[%s3847_s9 + $0x58] sm:$0xff] }
  0x29   :  { %217 = vst [vmem:[#allocation4 + $0x50] sm:$0xff] %v216_v42  ;;  %v220_v44 = vld [vmem:[%s3847_s9 + $0x60] sm:$0xff]  ;;  %v222_v45 = vld [vmem:[%s3847_s9 + $0x68] sm:$0xff]  ;;  %219 = vst [vmem:[#allocation4 + $0x58] sm:$0xff] %v218_v43 }
  0x2a   :  { %221 = vst [vmem:[#allocation4 + $0x60] sm:$0xff] %v220_v44  ;;  %223 = vst [vmem:[#allocation4 + $0x68] sm:$0xff] %v222_v45  ;;  %v224_v46 = vld [vmem:[%s3847_s9 + $0x70] sm:$0xff]  ;;  %v226_v47 = vld [vmem:[%s3847_s9 + $0x78] sm:$0xff] }
  0x2b   :  { %225 = vst [vmem:[#allocation4 + $0x70] sm:$0xff] %v224_v46  ;;  %227 = vst [vmem:[#allocation4 + $0x78] sm:$0xff] %v226_v47  ;;  %v2933_v48 = vld [vmem:[#allocation7 + $0xe4] ss:$16 sps:$4 sm:$0xff]   ;;  %v2937_v51 = vld [vmem:[#allocation7 + $0xe0] ss:$16 sps:$4 sm:$0xff]  }
  0x2c   :  { %v2935_v49 = vld [vmem:[#allocation7 + $0x2e4] ss:$16 sps:$4 sm:$0xff]   ;;  %908 = vmatprep.subr.bf16.mxu0 %v2933_v48  ;;  %v2938_v52 = vld [vmem:[#allocation7 + $0x2e0] ss:$16 sps:$4 sm:$0xff]   ;;  %v3611_v46 = vld [vmem:[%s3838_s0 + $0x18] sm:$0xff] }
  0x2d   :  { %959 = vmatprep.subr.bf16.mxu1 %v2935_v49  ;;  %v2939_v53 = vld [vmem:[#allocation7 + $0xc4] ss:$16 sps:$4 sm:$0xff]   ;;  %909 = vmatpush1.bf16.msra.mxu0 %v2937_v51  ;;  %v2943_v55 = vld [vmem:[#allocation7 + $0xc0] ss:$16 sps:$4 sm:$0xff]  }
  0x2e   :  { %960 = vmatpush1.bf16.msra.mxu1 %v2938_v52  ;;  %v2941_v54 = vld [vmem:[#allocation7 + $0x2c4] ss:$16 sps:$4 sm:$0xff]   ;;  %910 = vmatprep.subr.bf16.mxu0 %v2939_v53  ;;  %v2944_v56 = vld [vmem:[#allocation7 + $0x2c0] ss:$16 sps:$4 sm:$0xff]   ;;  %v264_v52 = vrot.slane %v3611_v46, 2  ;;  %v270_v53 = vrot.slane %v3611_v46, 3 }
  0x2f   :  { %961 = vmatprep.subr.bf16.mxu1 %v2941_v54  ;;  %v2945_v57 = vld [vmem:[#allocation7 + $0xa4] ss:$16 sps:$4 sm:$0xff]   ;;  %v2949_v59 = vld [vmem:[#allocation7 + $0xa0] ss:$16 sps:$4 sm:$0xff]  }
  0x30   :  { %v2947_v58 = vld [vmem:[#allocation7 + $0x2a4] ss:$16 sps:$4 sm:$0xff]   ;;  %v2950_v60 = vld [vmem:[#allocation7 + $0x2a0] ss:$16 sps:$4 sm:$0xff]  }
  0x31   :  { %911 = vmatpush1.bf16.msra.mxu0 %v2943_v55  ;;  %v2951_v61 = vld [vmem:[#allocation7 + $0x84] ss:$16 sps:$4 sm:$0xff]   ;;  %v2955_v63 = vld [vmem:[#allocation7 + $0x80] ss:$16 sps:$4 sm:$0xff]  }
  0x32   :  { %962 = vmatpush1.bf16.msra.mxu1 %v2944_v56  ;;  %912 = vmatprep.subr.bf16.mxu0 %v2945_v57  ;;  %v2953_v62 = vld [vmem:[#allocation7 + $0x284] ss:$16 sps:$4 sm:$0xff]   ;;  %v2956_v32 = vld [vmem:[#allocation7 + $0x280] ss:$16 sps:$4 sm:$0xff]  }
  0x33   :  { %963 = vmatprep.subr.bf16.mxu1 %v2947_v58  ;;  %v2957_v33 = vld [vmem:[#allocation7 + $0x64] ss:$16 sps:$4 sm:$0xff]   ;;  %v2961_v35 = vld [vmem:[#allocation7 + $0x60] ss:$16 sps:$4 sm:$0xff]   ;;  %v309_v58 = vsel %vm306_vm2, %v264_v52, %v270_v53 }
  0x34   :  { %v2959_v34 = vld [vmem:[#allocation7 + $0x264] ss:$16 sps:$4 sm:$0xff]   ;;  %v2962_v36 = vld [vmem:[#allocation7 + $0x260] ss:$16 sps:$4 sm:$0xff]  }
  0x35   :  { %913 = vmatpush1.bf16.msra.mxu0 %v2949_v59  ;;  %v2963_v37 = vld [vmem:[#allocation7 + $0x44] ss:$16 sps:$4 sm:$0xff]   ;;  %v2967_v39 = vld [vmem:[#allocation7 + $0x40] ss:$16 sps:$4 sm:$0xff]  }
  0x36   :  { %964 = vmatpush1.bf16.msra.mxu1 %v2950_v60  ;;  %914 = vmatprep.subr.bf16.mxu0 %v2951_v61  ;;  %v2965_v38 = vld [vmem:[#allocation7 + $0x244] ss:$16 sps:$4 sm:$0xff]   ;;  %v2968_v40 = vld [vmem:[#allocation7 + $0x240] ss:$16 sps:$4 sm:$0xff]  }
  0x37   :  { %965 = vmatprep.subr.bf16.mxu1 %v2953_v62  ;;  %v2969_v41 = vld [vmem:[#allocation7 + $0x24] ss:$16 sps:$4 sm:$0xff]   ;;  %v2973_v43 = vld [vmem:[#allocation7 + $0x20] ss:$16 sps:$4 sm:$0xff]  }
  0x38   :  { %v2971_v42 = vld [vmem:[#allocation7 + $0x224] ss:$16 sps:$4 sm:$0xff]   ;;  %v2974_v49 = vld [vmem:[#allocation7 + $0x220] ss:$16 sps:$4 sm:$0xff]  }
  0x39   :  { %915 = vmatpush1.bf16.msra.mxu0 %v2955_v63  ;;  %v3601_v44 = vld [vmem:[%s3838_s0] sm:$0xff]  ;;  %v3606_v45 = vld [vmem:[%s3838_s0 + $0x10] sm:$0xff] }
  0x3a   :  { %966 = vmatpush1.bf16.msra.mxu1 %v2956_v32  ;;  %916 = vmatprep.subr.bf16.mxu0 %v2957_v33  ;;  %v3614_v47 = vrot.slane %v3601_v44, 1  ;;  %v257_v48 = vrot.slane %v3606_v45, 1  ;;  %v2975_v51 = vld [vmem:[#allocation7 + $0x4] ss:$16 sps:$4 sm:$0xff]   ;;  %v2979_v59 = vld [vmem:[#allocation7] ss:$16 sps:$4 sm:$0xff]  }
  0x3b   :  { %967 = vmatprep.subr.bf16.mxu1 %v2959_v34  ;;  %v2977_v54 = vld [vmem:[#allocation7 + $0x204] ss:$16 sps:$4 sm:$0xff]   ;;  %v2980_v60 = vld [vmem:[#allocation7 + $0x200] ss:$16 sps:$4 sm:$0xff]   ;;  %v2985_v33 = vld [vmem:[#allocation7 + $0xec] ss:$16 sps:$4 sm:$0xff]  }
  0x3c   :  { %v276_v55 = vrot.slane %v3614_v47, 4  ;;  %v282_v56 = vrot.slane %v3614_v47, 5  ;;  %v301_v57 = vsel %vm298_vm0, %v3606_v45, %v257_v48  ;;  %v2981_v62 = vld [vmem:[#allocation7 + $0x1e4] ss:$16 sps:$4 sm:$0xff]   ;;  %v2997_v48 = vld [vmem:[#allocation7 + $0xac] ss:$16 sps:$4 sm:$0xff]  }
  0x3d   :  { %917 = vmatpush1.bf16.msra.mxu0 %v2961_v35  ;;  %v305_v63 = vsel %vm302_vm1, %v301_v57, %v264_v52  ;;  %v2983_v35 = vld [vmem:[#allocation7 + $0xe8] ss:$16 sps:$4 sm:$0xff]   ;;  %v2998_v52 = vld [vmem:[#allocation7 + $0x1a0] ss:$16 sps:$4 sm:$0xff]   ;;  %v2999_v53 = vld [vmem:[#allocation7 + $0x184] ss:$16 sps:$4 sm:$0xff]  }
  0x3e   :  { %968 = vmatpush1.bf16.msra.mxu1 %v2962_v36  ;;  %918 = vmatprep.subr.bf16.mxu0 %v2963_v37  ;;  %v313_v61 = vsel %vm310_vm3, %v309_v58, %v276_v55  ;;  %v2986_v36 = vld [vmem:[#allocation7 + $0x1e0] ss:$16 sps:$4 sm:$0xff]   ;;  %v2987_v37 = vld [vmem:[#allocation7 + $0x1c4] ss:$16 sps:$4 sm:$0xff]   ;;  %v3003_v55 = vld [vmem:[#allocation7 + $0x8c] ss:$16 sps:$4 sm:$0xff]  }
  0x3f   :  { %969 = vmatprep.subr.bf16.mxu1 %v2965_v38  ;;  %v317_v32 = vsel %vm314_vm4, %v313_v61, %v282_v56  ;;  %v2991_v38 = vld [vmem:[#allocation7 + $0xcc] ss:$16 sps:$4 sm:$0xff]   ;;  %v281_v57 = vrot.slane %v3611_v46, 5  ;;  %v3001_v58 = vld [vmem:[#allocation7 + $0x88] ss:$16 sps:$4 sm:$0xff]  }
  0x40   :  { %v3629_v34 = vpack.c.bf16 %v317_v32, %v305_v63  ;;  %v249_v61 = vld [vmem:[%s3838_s0 + $0x8] sm:$0xff] }
  0x41   :  { %919 = vmatpush1.bf16.msra.mxu0 %v2967_v39  ;;  %v2989_v39 = vld [vmem:[#allocation7 + $0xc8] ss:$16 sps:$4 sm:$0xff]   ;;  %v3009_v63 = vld [vmem:[#allocation7 + $0x6c] ss:$16 sps:$4 sm:$0xff]   ;;  %v255_v32 = vrot.slane %v249_v61, 1 }
  0x42   :  { %970 = vmatpush1.bf16.msra.mxu1 %v2968_v40  ;;  %920 = vmatprep.subr.bf16.mxu0 %v2969_v41  ;;  %v2992_v40 = vld [vmem:[#allocation7 + $0x1c0] ss:$16 sps:$4 sm:$0xff]   ;;  %v2993_v41 = vld [vmem:[#allocation7 + $0x1a4] ss:$16 sps:$4 sm:$0xff]  }
  0x43   :  { %971 = vmatprep.subr.bf16.mxu1 %v2971_v42  ;;  %v263_v42 = vrot.slane %v3606_v45, 2 }
  0x45   :  { %921 = vmatpush1.bf16.msra.mxu0 %v2973_v43  ;;  %v269_v43 = vrot.slane %v3606_v45, 3 }
  0x46   :  { %972 = vmatpush1.bf16.msra.mxu1 %v2974_v49  ;;  %922 = vmatprep.subr.bf16.mxu0 %v2975_v51  ;;  %v2995_v49 = vld [vmem:[#allocation7 + $0xa8] ss:$16 sps:$4 sm:$0xff]   ;;  %v275_v51 = vrot.slane %v3611_v46, 4 }
  0x47   :  { %973 = vmatprep.subr.bf16.mxu1 %v2977_v54  ;;  %v308_v54 = vsel %vm306_vm2, %v263_v42, %v269_v43  ;;  %v3015_v43 = vld [vmem:[#allocation7 + $0x4c] ss:$16 sps:$4 sm:$0xff]  }
  0x49   :  { %923 = vmatpush1.bf16.msra.mxu0 %v2979_v59  ;;  %v3004_v59 = vld [vmem:[#allocation7 + $0x180] ss:$16 sps:$4 sm:$0xff]  }
  0x4a   :  { %974 = vmatpush1.bf16.msra.mxu1 %v2980_v60  ;;  %924 = vmatprep.subr.bf16.mxu0 %v2981_v62  ;;  %v312_v60 = vsel %vm310_vm3, %v308_v54, %v275_v51  ;;  %v3005_v62 = vld [vmem:[#allocation7 + $0x164] ss:$16 sps:$4 sm:$0xff]   ;;  %v268_v51 = vrot.slane %v249_v61, 3 }
  0x4b   :  { %1010 = vmatprep.subr.bf16.mxu1 %v2985_v33  ;;  %v316_v33 = vsel %vm314_vm4, %v312_v60, %v281_v57  ;;  %v274_v60 = vrot.slane %v3606_v45, 4 }
  0x4d   :  { %992 = vmatmul.mubr.bf16.vlgmr.msra.gmra.mxu1 %v3629_v34  ;;  %925 = vmatpush2.bf16.msra.mxu0 %v2986_v36  ;;  %v288_v36 = vrot.slane %v255_v32, 6 }
  0x4e   :  { %1011 = vmatpush1.bf16.msra.mxu1 %v2983_v35  ;;  %926 = vmatprep.subr.bf16.mxu0 %v2987_v37  ;;  %v300_v35 = vsel %vm298_vm0, %v249_v61, %v255_v32  ;;  %v3007_v37 = vld [vmem:[#allocation7 + $0x68] ss:$16 sps:$4 sm:$0xff]  }
  0x4f   :  { %1012 = vmatprep.subr.bf16.mxu1 %v2991_v38  ;;  %1001 = vmatprep.mubr.bf16.mxu1 %v3319_v50  ;;  %v3010_v38 = vld [vmem:[#allocation7 + $0x160] ss:$16 sps:$4 sm:$0xff]  }
  0x51   :  { %927 = vmatpush2.bf16.msra.mxu0 %v2992_v40  ;;  %v294_v40 = vrot.slane %v255_v32, 7  ;;  %v287_v32 = vrot.slane %v3614_v47, 6 }
  0x52   :  { %1013 = vmatpush1.bf16.msra.mxu1 %v2989_v39  ;;  %928 = vmatprep.subr.bf16.mxu0 %v2993_v41  ;;  %v304_v39 = vsel %vm302_vm1, %v300_v35, %v263_v42  ;;  %v3011_v41 = vld [vmem:[#allocation7 + $0x144] ss:$16 sps:$4 sm:$0xff]   ;;  %v3013_v42 = vld [vmem:[#allocation7 + $0x48] ss:$16 sps:$4 sm:$0xff]   ;;  %v3027_v35 = vld [vmem:[#allocation7 + $0xc] ss:$16 sps:$4 sm:$0xff]  }
  0x53   :  { %1014 = vmatprep.subr.bf16.mxu1 %v2997_v48  ;;  %v423_v48 = vpack.c.bf16 %v316_v33, %v304_v39  ;;  %v3023_v33 = vld [vmem:[#allocation7 + $0x104] ss:$16 sps:$4 sm:$0xff]   ;;  %v3028_v39 = vld [vmem:[#allocation7 + $0x100] ss:$16 sps:$4 sm:$0xff]  }
  0x55   :  { %929 = vmatpush2.bf16.msra.mxu0 %v2998_v52  ;;  %v262_v52 = vrot.slane %v249_v61, 2  ;;  %940 = vmatprep.mubr.bf16.mxu0 %v423_v48  ;;  %v3019_v61 = vld [vmem:[#allocation7 + $0x28] ss:$16 sps:$4 sm:$0xff]  }
  0x56   :  { %1015 = vmatpush1.bf16.msra.mxu1 %v2995_v49  ;;  %930 = vmatprep.subr.bf16.mxu0 %v2999_v53  ;;  %v321_v49 = vsel %vm318_vm5, %v282_v56, %v288_v36  ;;  %v280_v56 = vrot.slane %v3606_v45, 5  ;;  %v299_v36 = vsel %vm298_vm0, %v3601_v44, %v3614_v47  ;;  %v3025_v45 = vld [vmem:[#allocation7 + $0x8] ss:$16 sps:$4 sm:$0xff]   ;;  %v3034_v44 = vld [vmem:[#allocation7 + $0x2ec] ss:$16 sps:$4 sm:$0xff]  }
  0x57   :  { %1016 = vmatprep.subr.bf16.mxu1 %v3003_v55  ;;  %v325_v53 = vsel %vm322_vm6, %v321_v49, %v294_v40  ;;  %v3016_v55 = vld [vmem:[#allocation7 + $0x140] ss:$16 sps:$4 sm:$0xff]   ;;  %v303_v40 = vsel %vm302_vm1, %v299_v36, %v262_v52  ;;  %v286_v49 = vrot.slane %v3611_v46, 6 }
  0x58   :  { %v3651_v54 = vpack.c.bf16 %v325_v53, %v325_v53  ;;  %v3029_v53 = vld [vmem:[#allocation7 + $0x1e8] ss:$16 sps:$4 sm:$0xff]  }
  0x59   :  { %931 = vmatpush2.bf16.msra.mxu0 %v3004_v59  ;;  %v3021_v59 = vld [vmem:[#allocation7 + $0x2c] ss:$16 sps:$4 sm:$0xff]  }
  0x5a   :  { %1017 = vmatpush1.bf16.msra.mxu1 %v3001_v58  ;;  %932 = vmatprep.subr.bf16.mxu0 %v3005_v62  ;;  %v3017_v58 = vld [vmem:[#allocation7 + $0x124] ss:$16 sps:$4 sm:$0xff]   ;;  %v307_v62 = vsel %vm306_vm2, %v262_v52, %v268_v51  ;;  %v3032_v52 = vld [vmem:[#allocation7 + $0x2e8] ss:$16 sps:$4 sm:$0xff]  }
  0x5b   :  { %1018 = vmatprep.subr.bf16.mxu1 %v3009_v63  ;;  %1002 = vmatmul.mubr.bf16.gmra.mxu1 %v3651_v54  ;;  %v3022_v63 = vld [vmem:[#allocation7 + $0x120] ss:$16 sps:$4 sm:$0xff]  }
  0x5c   :  { %1042 = vmatprep.mubr.bf16.mxu1 %v423_v48  ;;  %v3031_v48 = vld [vmem:[#allocation7 + $0x1ec] ss:$16 sps:$4 sm:$0xff]  }
  0x5d   :  { %933 = vmatpush2.bf16.msra.mxu0 %v3010_v38  ;;  %v293_v38 = vrot.slane %v3614_v47, 7 }
  0x5e   :  { %1019 = vmatpush1.bf16.msra.mxu1 %v3007_v37  ;;  %934 = vmatprep.subr.bf16.mxu0 %v3011_v41  ;;  %v311_v37 = vsel %vm310_vm3, %v307_v62, %v274_v60 }
  0x5f   :  { %1020 = vmatprep.subr.bf16.mxu1 %v3015_v43  ;;  %v315_v41 = vsel %vm314_vm4, %v311_v37, %v280_v56  ;;  %v320_v43 = vsel %vm318_vm5, %v281_v57, %v287_v32  ;;  %v3040_v57 = vld [vmem:[#allocation7 + $0x2cc] ss:$16 sps:$4 sm:$0xff]  }
  0x60   :  { %v3669_v51 = vpack.c.bf16 %v315_v41, %v303_v40  ;;  %v324_v47 = vsel %vm322_vm6, %v320_v43, %v293_v38 }
  0x61   :  { %935 = vmatpush2.bf16.msra.mxu0 %v3016_v55  ;;  %v3037_v55 = vld [vmem:[#allocation7 + $0x1cc] ss:$16 sps:$4 sm:$0xff]  }
  0x62   :  { %1021 = vmatpush1.bf16.msra.mxu1 %v3013_v42  ;;  %936 = vmatprep.subr.bf16.mxu0 %v3017_v58  ;;  %v292_v42 = vrot.slane %v3611_v46, 7  ;;  %v319_v58 = vsel %vm318_vm5, %v280_v56, %v286_v49 }
  0x63   :  { %1022 = vmatprep.subr.bf16.mxu1 %v3021_v59  ;;  %v3674_v59 = vpack.c.bf16 %v324_v47, %v324_v47 }
  0x65   :  { %937 = vmatpush2.bf16.msra.mxu0 %v3022_v63 }
  0x66   :  { %1023 = vmatpush1.bf16.msra.mxu1 %v3019_v61  ;;  %938 = vmatprep.subr.bf16.mxu0 %v3023_v33 }
  0x67   :  { %1024 = vmatprep.subr.bf16.mxu1 %v3027_v35 }
  0x69   :  { %939 = vmatpush2.bf16.msra.mxu0 %v3028_v39 }
  0x6a   :  { %1025 = vmatpush1.bf16.msra.mxu1 %v3025_v45  ;;  %1061 = vmatprep.subr.bf16.mxu0 %v3034_v44 }
  0x6b   :  { %1026 = vmatprep.subr.bf16.mxu1 %v3031_v48 }
  0x6c   :  { %235 = vsyncadd [#allocation6 + $0x2], 2048  ;;  %941 = vmatmul.mubr.bf16.vlgmr.msra.gmra.mxu0 %v3669_v51  ;;  %v3035_v60 = vld [vmem:[#allocation7 + $0x1c8] ss:$16 sps:$4 sm:$0xff]   ;;  %v323_v61 = vsel %vm322_vm6, %v319_v58, %v292_v42  ;;  %v3043_v46 = vld [vmem:[#allocation7 + $0x1ac] ss:$16 sps:$4 sm:$0xff]  }
  0x6d   :  { %1062 = vmatpush1.bf16.msra.mxu0 %v3032_v52  ;;  %v3038_v62 = vld [vmem:[#allocation7 + $0x2c8] ss:$16 sps:$4 sm:$0xff]   ;;  %v3046_v63 = vld [vmem:[#allocation7 + $0x2ac] ss:$16 sps:$4 sm:$0xff]   ;;  %950 = vmatprep.mubr.bf16.mxu0 %v3674_v59  ;;  %v425_v32 = vpack.c.bf16 %v323_v61, %v323_v61  ;;  %s3320_s0 = smov [#allocation5]  }
  0x6e   :  { %1027 = vmatpush2.bf16.msra.mxu1 %v3029_v53  ;;  %1063 = vmatprep.subr.bf16.mxu0 %v3040_v57  ;;  %v3041_v56 = vld [vmem:[#allocation7 + $0x1a8] ss:$16 sps:$4 sm:$0xff]   ;;  %v3049_v35 = vld [vmem:[#allocation7 + $0x18c] ss:$16 sps:$4 sm:$0xff]   ;;  %s244_s25 = sshll.u32 %s3320_s0, 4  ;;  %s245_s25 = int_to_ptr.vmem [resolvable:$true] %s244_s25 }
  0x6f   :  { %1028 = vmatprep.subr.bf16.mxu1 %v3037_v55  ;;  %v3044_v33 = vld [vmem:[#allocation7 + $0x2a8] ss:$16 sps:$4 sm:$0xff]   ;;  %v3052_v36 = vld [vmem:[#allocation7 + $0x28c] ss:$16 sps:$4 sm:$0xff]   ;;  %s3293_s26 = scalar_lea.vmem %s245_s25, 1024  ;;  %p3298_p11 = scmp.lt.s32.totalorder %s245_s25, %s245_s25 }
  0x70   :  { %v3047_v37 = vld [vmem:[#allocation7 + $0x188] ss:$16 sps:$4 sm:$0xff]   ;;  %v3055_v45 = vld [vmem:[#allocation7 + $0x16c] ss:$16 sps:$4 sm:$0xff]   ;;  %p3294_p10 = scmp.ne.s32.totalorder %s245_s25, %s3293_s26  ;;  %p3299_p12 = scmp.lt.s32.totalorder %s3293_s26, %s3293_s26 }
  0x71   :  { %1064 = vmatpush1.bf16.msra.mxu0 %v3038_v62  ;;  %v3050_v38 = vld [vmem:[#allocation7 + $0x288] ss:$16 sps:$4 sm:$0xff]   ;;  %v3058_v39 = vld [vmem:[#allocation7 + $0x26c] ss:$16 sps:$4 sm:$0xff]  }
  0x72   :  { %1029 = vmatpush2.bf16.msra.mxu1 %v3035_v60  ;;  %1065 = vmatprep.subr.bf16.mxu0 %v3046_v63  ;;  %v3053_v40 = vld [vmem:[#allocation7 + $0x168] ss:$16 sps:$4 sm:$0xff]   ;;  %v3061_v43 = vld [vmem:[#allocation7 + $0x14c] ss:$16 sps:$4 sm:$0xff]   ;;  %p3300_p13 = por %p3299_p12, %p3298_p11 }
  0x73   :  { %1030 = vmatprep.subr.bf16.mxu1 %v3043_v46  ;;  %v3056_v41 = vld [vmem:[#allocation7 + $0x268] ss:$16 sps:$4 sm:$0xff]   ;;  %v3064_v48 = vld [vmem:[#allocation7 + $0x24c] ss:$16 sps:$4 sm:$0xff]  }
  0x74   :  { %951 = vmatmul.mubr.bf16.gmra.mxu0 %v425_v32  ;;  %v3059_v44 = vld [vmem:[#allocation7 + $0x148] ss:$16 sps:$4 sm:$0xff]   ;;  %v3067_v47 = vld [vmem:[#allocation7 + $0x12c] ss:$16 sps:$4 sm:$0xff]   ;;  %p3301_p0 = pnand %p3300_p13, %p3294_p10 }
  0x75   :  { %1066 = vmatpush1.bf16.msra.mxu0 %v3044_v33  ;;  %1093 = vmatprep.mubr.bf16.mxu0 %v3319_v50  ;;  %v3062_v49 = vld [vmem:[#allocation7 + $0x248] ss:$16 sps:$4 sm:$0xff]   ;;  %v3070_v53 = vld [vmem:[#allocation7 + $0x22c] ss:$16 sps:$4 sm:$0xff]  }
  0x76   :  { %1031 = vmatpush2.bf16.msra.mxu1 %v3041_v56  ;;  %1067 = vmatprep.subr.bf16.mxu0 %v3052_v36  ;;  %v3065_v52 = vld [vmem:[#allocation7 + $0x128] ss:$16 sps:$4 sm:$0xff]   ;;  %v3073_v55 = vld [vmem:[#allocation7 + $0x10c] ss:$16 sps:$4 sm:$0xff]  }
  0x77   :  { %1032 = vmatprep.subr.bf16.mxu1 %v3049_v35  ;;  %v3068_v42 = vld [vmem:[#allocation7 + $0x228] ss:$16 sps:$4 sm:$0xff]   ;;  %v3076_v57 = vld [vmem:[#allocation7 + $0x20c] ss:$16 sps:$4 sm:$0xff]  }
  0x78   :  { %v3071_v58 = vld [vmem:[#allocation7 + $0x108] ss:$16 sps:$4 sm:$0xff]  }
  0x79   :  { %1068 = vmatpush1.bf16.msra.mxu0 %v3050_v38  ;;  %v3074_v60 = vld [vmem:[#allocation7 + $0x208] ss:$16 sps:$4 sm:$0xff]  }
  0x7a   :  { %1033 = vmatpush2.bf16.msra.mxu1 %v3047_v37  ;;  %1069 = vmatprep.subr.bf16.mxu0 %v3058_v39 }
  0x7b   :  { %1034 = vmatprep.subr.bf16.mxu1 %v3055_v45 }
  0x7d   :  { %1070 = vmatpush1.bf16.msra.mxu0 %v3056_v41 }
  0x7e   :  { %1035 = vmatpush2.bf16.msra.mxu1 %v3053_v40  ;;  %1071 = vmatprep.subr.bf16.mxu0 %v3064_v48 }
  0x7f   :  { %1036 = vmatprep.subr.bf16.mxu1 %v3061_v43 }
  0x81   :  { %1072 = vmatpush1.bf16.msra.mxu0 %v3062_v49 }
  0x82   :  { %1037 = vmatpush2.bf16.msra.mxu1 %v3059_v44  ;;  %1073 = vmatprep.subr.bf16.mxu0 %v3070_v53 }
  0x83   :  { %1038 = vmatprep.subr.bf16.mxu1 %v3067_v47 }
  0x85   :  { %1074 = vmatpush1.bf16.msra.mxu0 %v3068_v42 }
  0x86   :  { %1039 = vmatpush2.bf16.msra.mxu1 %v3065_v52  ;;  %1075 = vmatprep.subr.bf16.mxu0 %v3076_v57 }
  0x87   :  { %1040 = vmatprep.subr.bf16.mxu1 %v3073_v55 }
  0x89   :  { %1076 = vmatpush1.bf16.msra.mxu0 %v3074_v60 }
  0x8a   :  { %1041 = vmatpush2.bf16.msra.mxu1 %v3071_v58 }
  0x8c   :  { %1094 = vmatmul.mubr.bf16.vlgmr.msra.gmra.mxu0 %v3629_v34 }
  0x8d   :  { %1043 = vmatmul.mubr.bf16.vlgmr.msra.gmra.mxu1 %v3669_v51  ;;  %1103 = vmatprep.mubr.bf16.mxu0 %v3319_v50 }
  0x8e   :  { %1052 = vmatprep.mubr.bf16.mxu1 %v3674_v59 }
  0x94   :  { %1104 = vmatmul.mubr.bf16.gmra.mxu0 %v3651_v54 }
  0x95   :  { %1053 = vmatmul.mubr.bf16.gmra.mxu1 %v425_v32 }
  0x96   :  { %3304 = shalt.err (!%p3301_p0)  }
  0x97   :  { %247 = dma.hbm_to_vmem [thread:$0]  %s3848_s10, 1024, %s245_s25, [#allocation6 + $0x3]  ;;  %v1168_v44 = vlaneseq }
  0x99   :  { %v3689_v57 = vshrl.u32 %v1168_v44, 7 }
  0x9b   :  { %3869 = vst [vmem:[#allocation30_spill] sm:$0xff] %v3689_v57 }
 0x10d   :  { %v993_v34 = vpop.f32.mrf.mxu1 }
 0x10f   :  { %v995_v51 = vpop.f32.mrf.mxu1 }
 0x111   :  { %v997_v50 = vpop.f32.mrf.mxu1 }
 0x113   :  { %v999_v59 = vpop.f32.mrf.mxu1 }
 0x11b   :  { %v1003_v62 = vpop.f32.mrf.mxu1 }
 0x11d   :  { %v1005_v54 = vpop.f32.mrf.mxu1 }
 0x11f   :  { %v1007_v61 = vpop.f32.mrf.mxu1 }
 0x121   :  { %v1008_v46 = vpop.f32.mrf.mxu1 }
 0x12c   :  { %v942_v63 = vpop.f32.mrf.mxu0 }
 0x12d   :  { %v994_v56 = vadd.f32 %v993_v34, %v942_v63 }
 0x12e   :  { %v944_v32 = vpop.f32.mrf.mxu0 }
 0x12f   :  { %v1120_v37 = vrot.slane %v994_v56, 6  ;;  %v996_v52 = vadd.f32 %v995_v51, %v944_v32  ;;  %v1166_v32 = vld [vmem:[%s3840_s2] sm:$0x3] }
 0x130   :  { %v946_v33 = vpop.f32.mrf.mxu0 }
 0x131   :  { %v998_v35 = vadd.f32 %v997_v50, %v946_v33 }
 0x132   :  { %v948_v36 = vpop.f32.mrf.mxu0 }
 0x133   :  { %v1121_v38 = vrot.slane %v998_v35, 6  ;;  %v1000_v49 = vadd.f32 %v999_v59, %v948_v36  ;;  %v3855_v59 = vsub.s32 0, %v3689_v57 }
 0x134   :  { %v952_v45 = vpop.f32.mrf.mxu0 }
 0x135   :  { %v1122_v39 = vsel %vm318_vm5, %v1120_v37, %v1121_v38  ;;  %v1124_v60 = vrot.slane %v1000_v49, 6  ;;  %v1004_v34 = vadd.f32 %v1003_v62, %v952_v45 }
 0x136   :  { %v1136_v40 = vmax.f32 %v994_v56, %v1122_v39  ;;  %v954_v41 = vpop.f32.mrf.mxu0  ;;  %v1123_v56 = vrot.slane %v996_v52, 6 }
 0x137   :  { %v1006_v33 = vadd.f32 %v1005_v54, %v954_v41  ;;  %v1144_v45 = vrot.slane %v1004_v34, 6 }
 0x138   :  { %v956_v43 = vpop.f32.mrf.mxu0  ;;  %v1125_v62 = vsel %vm318_vm5, %v1123_v56, %v1124_v60  ;;  %v3870_v60 = vsub.s32 1, %v3689_v57 }
 0x139   :  { %v1137_v17 = vmax.f32 %v996_v52, %v1125_v62  ;;  %v1152_v18 = vmax.f32 %v998_v35, %v1144_v45 }
 0x13a   :  { %v957_v48 = vpop.f32.mrf.mxu0  ;;  %v1175_v56 = vrot.slane %v1166_v32, %v3870_v60 }
 0x14c   :  { %v1095_v53 = vpop.f32.mrf.mxu0 }
 0x14d   :  { %v1044_v47 = vpop.f32.mrf.mxu1 }
 0x14e   :  { %v1097_v55 = vpop.f32.mrf.mxu0  ;;  %v1096_v58 = vadd.f32 %v1095_v53, %v1044_v47 }
 0x14f   :  { %v1046_v42 = vpop.f32.mrf.mxu1 }
 0x150   :  { %v1099_v61 = vpop.f32.mrf.mxu0  ;;  %v1098_v46 = vadd.f32 %v1097_v55, %v1046_v42  ;;  %v1126_v36 = vrot.slane %v1096_v58, 6  ;;  %v1145_v42 = vrot.slane %v1006_v33, 6 }
 0x151   :  { %v1048_v50 = vpop.f32.mrf.mxu1 }
 0x152   :  { %v1100_v63 = vadd.f32 %v1099_v61, %v1048_v50  ;;  %v1101_v38 = vpop.f32.mrf.mxu0  ;;  %v1129_v47 = vrot.slane %v1098_v46, 6  ;;  %v1171_v50 = vrot.slane %v1166_v32, %v3855_v59  ;;  %v1153_v59 = vmax.f32 %v1000_v49, %v1145_v42 }
 0x153   :  { %v1050_v37 = vpop.f32.mrf.mxu1  ;;  %v1157_v21 = vmax.f32 %v1006_v33, %v1145_v42 }
 0x154   :  { %v1127_v39 = vrot.slane %v1100_v63, 6  ;;  %v1102_v51 = vadd.f32 %v1101_v38, %v1050_v37  ;;  %v1105_v44 = vpop.f32.mrf.mxu0 }
 0x155   :  { %v1054_v48 = vpop.f32.mrf.mxu1 }
 0x156   :  { %v1128_v54 = vsel %vm318_vm5, %v1126_v36, %v1127_v39  ;;  %v1130_v41 = vrot.slane %v1102_v51, 6  ;;  %v1106_v53 = vadd.f32 %v1105_v44, %v1054_v48  ;;  %v1107_v37 = vpop.f32.mrf.mxu0  ;;  %v1156_v44 = vmax.f32 %v1004_v34, %v1144_v45 }
 0x157   :  { %v1138_v55 = vmax.f32 %v1096_v58, %v1128_v54  ;;  %v1056_v61 = vpop.f32.mrf.mxu1 }
 0x158   :  { %v1131_v38 = vsel %vm318_vm5, %v1129_v47, %v1130_v41  ;;  %v1146_v43 = vrot.slane %v1106_v53, 6  ;;  %v1108_v16 = vadd.f32 %v1107_v37, %v1056_v61  ;;  %v1109_v48 = vpop.f32.mrf.mxu0 }
 0x159   :  { %v1160_v19 = vmax.f32 %v1136_v40, %v1138_v55  ;;  %v1139_v36 = vmax.f32 %v1098_v46, %v1131_v38  ;;  %v1058_v39 = vpop.f32.mrf.mxu1 }
 0x15a   :  { %v1154_v58 = vmax.f32 %v1100_v63, %v1146_v43  ;;  %v1158_v54 = vmax.f32 %v1106_v53, %v1146_v43  ;;  %v1147_v20 = vrot.slane %v1108_v16, 6  ;;  %v1110_v41 = vpop.f32.mrf.mxu0 }
 0x15b   :  { %v1161_v22 = vmax.f32 %v1137_v17, %v1139_v36  ;;  %v1178_v23 = vadd.f32 %v1171_v50, %v1160_v19  ;;  %v1059_v47 = vpop.f32.mrf.mxu1 }
 0x15c   :  { %v1162_v61 = vmax.f32 %v1152_v18, %v1154_v58  ;;  %v1164_v37 = vmax.f32 %v1156_v44, %v1158_v54  ;;  %v1155_v57 = vmax.f32 %v1102_v51, %v1147_v20  ;;  %v1159_v32 = vmax.f32 %v1108_v16, %v1147_v20 }
 0x15d   :  { %vm1180_vm7 = vcmp.ge.f32.partialorder %v1178_v23, 0.0  ;;  %v1182_v35 = vmul.f32 0.1, %v1178_v23  ;;  %v1179_v40 = vadd.f32 %v1175_v56, %v1161_v22 }
 0x15e   :  { %v1186_v52 = vadd.f32 %v1171_v50, %v1162_v61  ;;  %v1188_v46 = vadd.f32 %v1171_v50, %v1164_v37  ;;  %v1163_v62 = vmax.f32 %v1153_v59, %v1155_v57  ;;  %v1165_v34 = vmax.f32 %v1157_v21, %v1159_v32 }
 0x15f   :  { %v1184_v63 = vsel %vm1180_vm7, %v1178_v23, %v1182_v35  ;;  %vm1181_vm8 = vcmp.ge.f32.partialorder %v1179_v40, 0.0  ;;  %v1183_v43 = vmul.f32 0.1, %v1179_v40 }
 0x160   :  { %vm1190_vm9 = vcmp.ge.f32.partialorder %v1186_v52, 0.0  ;;  %vm1192_vm10 = vcmp.ge.f32.partialorder %v1188_v46, 0.0  ;;  %v1194_v17 = vmul.f32 0.1, %v1186_v52  ;;  %v1196_v19 = vmul.f32 0.1, %v1188_v46 }
 0x161   :  { %v1216_v49 = vrot.slane %v1184_v63, 1  ;;  %v1185_v33 = vsel %vm1181_vm8, %v1179_v40, %v1183_v43  ;;  %v1187_v18 = vadd.f32 %v1175_v56, %v1163_v62  ;;  %v1189_v45 = vadd.f32 %v1175_v56, %v1165_v34 }
 0x162   :  { %v1198_v51 = vsel %vm1190_vm9, %v1186_v52, %v1194_v17  ;;  %v1200_v16 = vsel %vm1192_vm10, %v1188_v46, %v1196_v19  ;;  %v1217_v57 = vrot.slane %v1185_v33, 1 }
 0x163   :  { %v1206_v20 = vrot.slane %v1198_v51, 4  ;;  %v1207_v53 = vrot.slane %v1200_v16, 4  ;;  %v1222_v22 = vrot.slane %v1216_v49, 1  ;;  %vm1191_vm11 = vcmp.ge.f32.partialorder %v1187_v18, 0.0 }
 0x164   :  { %vm1193_vm12 = vcmp.ge.f32.partialorder %v1189_v45, 0.0  ;;  %v1230_v23 = vrot.slane %v1216_v49, 4  ;;  %v1195_v59 = vmul.f32 0.1, %v1187_v18  ;;  %v1197_v42 = vmul.f32 0.1, %v1189_v45 }
 0x165   :  { %v1208_v21 = vsel %vm310_vm3, %v1206_v20, %v1207_v53  ;;  %v1242_v60 = vrot.slane %v1216_v49, 5  ;;  %v1252_v36 = vsel %vm318_vm5, %v1184_v63, %v1216_v49  ;;  %v1256_v56 = vsel %vm318_vm5, %v1216_v49, %v1222_v22 }
 0x166   :  { %v1220_v55 = vrot.slane %v1208_v21, 1  ;;  %v1228_v50 = vrot.slane %v1208_v21, 4  ;;  %v1240_v38 = vrot.slane %v1208_v21, 5  ;;  %v1199_v39 = vsel %vm1191_vm11, %v1187_v18, %v1195_v59 }
 0x167   :  { %v1201_v48 = vsel %vm1193_vm12, %v1189_v45, %v1197_v42  ;;  %v1209_v37 = vrot.slane %v1199_v39, 4  ;;  %v1223_v62 = vrot.slane %v1217_v57, 1  ;;  %v1231_v17 = vrot.slane %v1217_v57, 4 }
 0x168   :  { %v1232_v44 = vrot.slane %v1220_v55, 4  ;;  %v1244_v58 = vrot.slane %v1220_v55, 5  ;;  %v1254_v54 = vsel %vm318_vm5, %v1208_v21, %v1220_v55  ;;  %v1258_v47 = vsel %vm310_vm3, %v1252_v36, %v1228_v50 }
 0x169   :  { %v1260_v41 = vsel %vm310_vm3, %v1254_v54, %v1230_v23  ;;  %v3710_v61 = vsel %vm302_vm1, %v1258_v47, %v1240_v38  ;;  %v1210_v32 = vrot.slane %v1201_v48, 4  ;;  %v1243_v19 = vrot.slane %v1217_v57, 5 }
 0x16a   :  { %v1262_v35 = vsel %vm310_vm3, %v1256_v56, %v1232_v44  ;;  %v3714_v40 = vsel %vm302_vm1, %v1260_v41, %v1242_v60  ;;  %v1253_v49 = vsel %vm318_vm5, %v1185_v33, %v1217_v57  ;;  %v1257_v20 = vsel %vm318_vm5, %v1217_v57, %v1223_v62 }
 0x16b   :  { %v3717_v52 = vsel %vm302_vm1, %v1262_v35, %v1244_v58  ;;  %v1211_v46 = vsel %vm310_vm3, %v1209_v37, %v1210_v32 }
 0x16c   :  { %v1221_v34 = vrot.slane %v1211_v46, 1  ;;  %v1229_v63 = vrot.slane %v1211_v46, 4  ;;  %v1241_v43 = vrot.slane %v1211_v46, 5 }
 0x16e   :  { %v1233_v18 = vrot.slane %v1221_v34, 4  ;;  %v1245_v45 = vrot.slane %v1221_v34, 5  ;;  %v1255_v51 = vsel %vm318_vm5, %v1211_v46, %v1221_v34  ;;  %v1259_v16 = vsel %vm310_vm3, %v1253_v49, %v1229_v63 }
 0x16f   :  { %v1261_v53 = vsel %vm310_vm3, %v1255_v51, %v1231_v17  ;;  %v1265_v22 = vsel %vm302_vm1, %v1259_v16, %v1241_v43 }
 0x170   :  { %v1263_v21 = vsel %vm310_vm3, %v1257_v20, %v1233_v18  ;;  %v1267_v23 = vsel %vm302_vm1, %v1261_v53, %v1243_v19 }
 0x171   :  { %v3729_v59 = vsel %vm302_vm1, %v1263_v21, %v1245_v45 }
 0x172   :  { %3307 = dma.done.wait [#allocation6], 12288 }
 0x173   :  { %3308 = vsyncadd [#allocation6], 4294955008  ;;  %v1371_v33 = vpack.c.bf16 %v1265_v22, %v1265_v22  ;;  %v1373_v42 = vpack.c.bf16 %v1267_v23, %v1267_v23  ;;  %v3077_v55 = vld [vmem:[#allocation2 + $0x74] ss:$8 sps:$4 sm:$0xff]   ;;  %v3081_v57 = vld [vmem:[#allocation2 + $0x70] ss:$8 sps:$4 sm:$0xff]  }
 0x174   :  { %v3079_v50 = vld [vmem:[#allocation2 + $0x174] ss:$8 sps:$4 sm:$0xff]   ;;  %1856 = vmatprep.subr.bf16.mxu0 %v3077_v55  ;;  %v3082_v38 = vld [vmem:[#allocation2 + $0x170] ss:$8 sps:$4 sm:$0xff]   ;;  %v3083_v60 = vld [vmem:[#allocation2 + $0x64] ss:$8 sps:$4 sm:$0xff]  }
 0x175   :  { %1888 = vmatprep.mubr.bf16.mxu0 %v1371_v33  ;;  %1929 = vmatprep.mubr.bf16.mxu1 %v1373_v42  ;;  %v3085_v36 = vld [vmem:[#allocation2 + $0x164] ss:$8 sps:$4 sm:$0xff]   ;;  %v3087_v56 = vld [vmem:[#allocation2 + $0x60] ss:$8 sps:$4 sm:$0xff]   ;;  %v3089_v48 = vld [vmem:[#allocation2 + $0x54] ss:$8 sps:$4 sm:$0xff]  }
 0x176   :  { %1897 = vmatprep.subr.bf16.mxu1 %v3079_v50  ;;  %1857 = vmatpush1.bf16.msra.mxu0 %v3081_v57  ;;  %v3088_v39 = vld [vmem:[#allocation2 + $0x160] ss:$8 sps:$4 sm:$0xff]   ;;  %v3091_v44 = vld [vmem:[#allocation2 + $0x154] ss:$8 sps:$4 sm:$0xff]   ;;  %v3093_v58 = vld [vmem:[#allocation2 + $0x50] ss:$8 sps:$4 sm:$0xff]  }
 0x177   :  { %1898 = vmatpush1.bf16.msra.mxu1 %v3082_v38  ;;  %1858 = vmatprep.subr.bf16.mxu0 %v3083_v60  ;;  %v3094_v54 = vld [vmem:[#allocation2 + $0x150] ss:$8 sps:$4 sm:$0xff]   ;;  %v3095_v47 = vld [vmem:[#allocation2 + $0x44] ss:$8 sps:$4 sm:$0xff]   ;;  %v3099_v37 = vld [vmem:[#allocation2 + $0x40] ss:$8 sps:$4 sm:$0xff]  }
 0x178   :  { %1899 = vmatprep.subr.bf16.mxu1 %v3085_v36  ;;  %v3097_v41 = vld [vmem:[#allocation2 + $0x144] ss:$8 sps:$4 sm:$0xff]   ;;  %v3100_v32 = vld [vmem:[#allocation2 + $0x140] ss:$8 sps:$4 sm:$0xff]   ;;  %v3101_v35 = vld [vmem:[#allocation2 + $0x34] ss:$8 sps:$4 sm:$0xff]  }
 0x179   :  { %v3103_v46 = vld [vmem:[#allocation2 + $0x134] ss:$8 sps:$4 sm:$0xff]   ;;  %v3105_v62 = vld [vmem:[#allocation2 + $0x30] ss:$8 sps:$4 sm:$0xff]   ;;  %v3107_v63 = vld [vmem:[#allocation2 + $0x24] ss:$8 sps:$4 sm:$0xff]  }
 0x17a   :  { %1859 = vmatpush1.bf16.msra.mxu0 %v3087_v56  ;;  %v3106_v34 = vld [vmem:[#allocation2 + $0x130] ss:$8 sps:$4 sm:$0xff]   ;;  %v3109_v43 = vld [vmem:[#allocation2 + $0x124] ss:$8 sps:$4 sm:$0xff]   ;;  %v3111_v17 = vld [vmem:[#allocation2 + $0x20] ss:$8 sps:$4 sm:$0xff]  }
 0x17b   :  { %1900 = vmatpush1.bf16.msra.mxu1 %v3088_v39  ;;  %1860 = vmatprep.subr.bf16.mxu0 %v3089_v48  ;;  %v3112_v19 = vld [vmem:[#allocation2 + $0x120] ss:$8 sps:$4 sm:$0xff]   ;;  %v3113_v49 = vld [vmem:[#allocation2 + $0x14] ss:$8 sps:$4 sm:$0xff]   ;;  %v3117_v45 = vld [vmem:[#allocation2 + $0x10] ss:$8 sps:$4 sm:$0xff]  }
 0x17c   :  { %1901 = vmatprep.subr.bf16.mxu1 %v3091_v44  ;;  %v3115_v18 = vld [vmem:[#allocation2 + $0x114] ss:$8 sps:$4 sm:$0xff]   ;;  %v3118_v51 = vld [vmem:[#allocation2 + $0x110] ss:$8 sps:$4 sm:$0xff]   ;;  %v3119_v16 = vld [vmem:[#allocation2 + $0x4] ss:$8 sps:$4 sm:$0xff]  }
 0x17d   :  { %v3121_v20 = vld [vmem:[#allocation2 + $0x104] ss:$8 sps:$4 sm:$0xff]   ;;  %v3123_v53 = vld [vmem:[#allocation2] ss:$8 sps:$4 sm:$0xff]   ;;  %v3125_v21 = vld [vmem:[#allocation2 + $0xf4] ss:$8 sps:$4 sm:$0xff]  }
 0x17e   :  { %1861 = vmatpush1.bf16.msra.mxu0 %v3093_v58  ;;  %v3124_v22 = vld [vmem:[#allocation2 + $0x100] ss:$8 sps:$4 sm:$0xff]   ;;  %v3127_v23 = vld [vmem:[#allocation2 + $0x1f4] ss:$8 sps:$4 sm:$0xff]   ;;  %v3129_v33 = vld [vmem:[#allocation2 + $0xf0] ss:$8 sps:$4 sm:$0xff]  }
 0x17f   :  { %1902 = vmatpush1.bf16.msra.mxu1 %v3094_v54  ;;  %1862 = vmatprep.subr.bf16.mxu0 %v3095_v47  ;;  %v3130_v42 = vld [vmem:[#allocation2 + $0x1f0] ss:$8 sps:$4 sm:$0xff]   ;;  %v3131_v55 = vld [vmem:[#allocation2 + $0xe4] ss:$8 sps:$4 sm:$0xff]   ;;  %v3135_v57 = vld [vmem:[#allocation2 + $0xe0] ss:$8 sps:$4 sm:$0xff]  }
 0x180   :  { %1903 = vmatprep.subr.bf16.mxu1 %v3097_v41  ;;  %v3133_v50 = vld [vmem:[#allocation2 + $0x1e4] ss:$8 sps:$4 sm:$0xff]   ;;  %v3136_v38 = vld [vmem:[#allocation2 + $0x1e0] ss:$8 sps:$4 sm:$0xff]   ;;  %v3137_v60 = vld [vmem:[#allocation2 + $0xd4] ss:$8 sps:$4 sm:$0xff]  }
 0x181   :  { %v3139_v36 = vld [vmem:[#allocation2 + $0x1d4] ss:$8 sps:$4 sm:$0xff]   ;;  %v3141_v56 = vld [vmem:[#allocation2 + $0xd0] ss:$8 sps:$4 sm:$0xff]   ;;  %v3143_v48 = vld [vmem:[#allocation2 + $0xc4] ss:$8 sps:$4 sm:$0xff]  }
 0x182   :  { %1863 = vmatpush1.bf16.msra.mxu0 %v3099_v37  ;;  %v3142_v39 = vld [vmem:[#allocation2 + $0x1d0] ss:$8 sps:$4 sm:$0xff]   ;;  %v3145_v44 = vld [vmem:[#allocation2 + $0x1c4] ss:$8 sps:$4 sm:$0xff]   ;;  %v3147_v58 = vld [vmem:[#allocation2 + $0xc0] ss:$8 sps:$4 sm:$0xff]  }
 0x183   :  { %1904 = vmatpush1.bf16.msra.mxu1 %v3100_v32  ;;  %1864 = vmatprep.subr.bf16.mxu0 %v3101_v35  ;;  %v3148_v54 = vld [vmem:[#allocation2 + $0x1c0] ss:$8 sps:$4 sm:$0xff]   ;;  %v3149_v47 = vld [vmem:[#allocation2 + $0xb4] ss:$8 sps:$4 sm:$0xff]   ;;  %v3153_v37 = vld [vmem:[#allocation2 + $0xb0] ss:$8 sps:$4 sm:$0xff]  }
 0x184   :  { %1905 = vmatprep.subr.bf16.mxu1 %v3103_v46  ;;  %v3151_v41 = vld [vmem:[#allocation2 + $0x1b4] ss:$8 sps:$4 sm:$0xff]   ;;  %v3154_v32 = vld [vmem:[#allocation2 + $0x1b0] ss:$8 sps:$4 sm:$0xff]   ;;  %v3155_v35 = vld [vmem:[#allocation2 + $0xa4] ss:$8 sps:$4 sm:$0xff]  }
 0x185   :  { %v3157_v46 = vld [vmem:[#allocation2 + $0x1a4] ss:$8 sps:$4 sm:$0xff]  }
 0x186   :  { %1865 = vmatpush1.bf16.msra.mxu0 %v3105_v62  ;;  %v3159_v62 = vld [vmem:[#allocation2 + $0xa0] ss:$8 sps:$4 sm:$0xff]  }
 0x187   :  { %1906 = vmatpush1.bf16.msra.mxu1 %v3106_v34  ;;  %1866 = vmatprep.subr.bf16.mxu0 %v3107_v63  ;;  %v3160_v34 = vld [vmem:[#allocation2 + $0x1a0] ss:$8 sps:$4 sm:$0xff]   ;;  %v3161_v63 = vld [vmem:[#allocation2 + $0x94] ss:$8 sps:$4 sm:$0xff]  }
 0x188   :  { %1907 = vmatprep.subr.bf16.mxu1 %v3109_v43  ;;  %v3163_v43 = vld [vmem:[#allocation2 + $0x194] ss:$8 sps:$4 sm:$0xff]  }
 0x18a   :  { %1867 = vmatpush1.bf16.msra.mxu0 %v3111_v17  ;;  %v3165_v17 = vld [vmem:[#allocation2 + $0x90] ss:$8 sps:$4 sm:$0xff]  }
 0x18b   :  { %1908 = vmatpush1.bf16.msra.mxu1 %v3112_v19  ;;  %1868 = vmatprep.subr.bf16.mxu0 %v3113_v49  ;;  %v3166_v19 = vld [vmem:[#allocation2 + $0x190] ss:$8 sps:$4 sm:$0xff]   ;;  %v3167_v49 = vld [vmem:[#allocation2 + $0x84] ss:$8 sps:$4 sm:$0xff]  }
 0x18c   :  { %1909 = vmatprep.subr.bf16.mxu1 %v3115_v18  ;;  %v3169_v18 = vld [vmem:[#allocation2 + $0x184] ss:$8 sps:$4 sm:$0xff]  }
 0x18e   :  { %1869 = vmatpush1.bf16.msra.mxu0 %v3117_v45  ;;  %v3171_v45 = vld [vmem:[#allocation2 + $0x80] ss:$8 sps:$4 sm:$0xff]  }
 0x18f   :  { %1910 = vmatpush1.bf16.msra.mxu1 %v3118_v51  ;;  %1870 = vmatprep.subr.bf16.mxu0 %v3119_v16  ;;  %v3172_v51 = vld [vmem:[#allocation2 + $0x180] ss:$8 sps:$4 sm:$0xff]   ;;  %v3175_v16 = vld [vmem:[#allocation2 + $0x274] ss:$8 sps:$4 sm:$0xff]  }
 0x190   :  { %1911 = vmatprep.subr.bf16.mxu1 %v3121_v20  ;;  %v1370_v20 = vpack.c.bf16 %v3710_v61, %v3710_v61  ;;  %v3179_v61 = vld [vmem:[#allocation2 + $0x250] ss:$8 sps:$4 sm:$0xff]  }
 0x192   :  { %1871 = vmatpush1.bf16.msra.mxu0 %v3123_v53  ;;  %v1372_v53 = vpack.c.bf16 %v3714_v40, %v3714_v40  ;;  %v3182_v40 = vld [vmem:[#allocation2 + $0x240] ss:$8 sps:$4 sm:$0xff]  }
 0x193   :  { %1912 = vmatpush1.bf16.msra.mxu1 %v3124_v22  ;;  %1872 = vmatprep.subr.bf16.mxu0 %v3125_v21  ;;  %v3173_v22 = vld [vmem:[#allocation2 + $0x270] ss:$8 sps:$4 sm:$0xff]   ;;  %v1375_v21 = vpack.c.bf16 %v3729_v59, %v3729_v59  ;;  %v3190_v59 = vld [vmem:[#allocation2 + $0x224] ss:$8 sps:$4 sm:$0xff]  }
 0x194   :  { %1913 = vmatprep.subr.bf16.mxu1 %v3127_v23  ;;  %v3178_v23 = vld [vmem:[#allocation2 + $0x264] ss:$8 sps:$4 sm:$0xff]  }
 0x196   :  { %1873 = vmatpush2.bf16.msra.mxu0 %v3129_v33  ;;  %v3176_v33 = vld [vmem:[#allocation2 + $0x260] ss:$8 sps:$4 sm:$0xff]  }
 0x197   :  { %1914 = vmatpush2.bf16.msra.mxu1 %v3130_v42  ;;  %1874 = vmatprep.subr.bf16.mxu0 %v3131_v55  ;;  %v3181_v42 = vld [vmem:[#allocation2 + $0x254] ss:$8 sps:$4 sm:$0xff]   ;;  %v3184_v55 = vld [vmem:[#allocation2 + $0x244] ss:$8 sps:$4 sm:$0xff]  }
 0x198   :  { %1915 = vmatprep.subr.bf16.mxu1 %v3133_v50  ;;  %v3187_v50 = vld [vmem:[#allocation2 + $0x234] ss:$8 sps:$4 sm:$0xff]  }
 0x19a   :  { %1875 = vmatpush2.bf16.msra.mxu0 %v3135_v57  ;;  %v3185_v57 = vld [vmem:[#allocation2 + $0x230] ss:$8 sps:$4 sm:$0xff]  }
 0x19b   :  { %1916 = vmatpush2.bf16.msra.mxu1 %v3136_v38  ;;  %1876 = vmatprep.subr.bf16.mxu0 %v3137_v60  ;;  %v3188_v38 = vld [vmem:[#allocation2 + $0x220] ss:$8 sps:$4 sm:$0xff]   ;;  %v3193_v60 = vld [vmem:[#allocation2 + $0x214] ss:$8 sps:$4 sm:$0xff]  }
 0x19c   :  { %1917 = vmatprep.subr.bf16.mxu1 %v3139_v36  ;;  %v3191_v36 = vld [vmem:[#allocation2 + $0x210] ss:$8 sps:$4 sm:$0xff]  }
 0x19e   :  { %1877 = vmatpush2.bf16.msra.mxu0 %v3141_v56  ;;  %v3196_v56 = vld [vmem:[#allocation2 + $0x204] ss:$8 sps:$4 sm:$0xff]  }
 0x19f   :  { %1918 = vmatpush2.bf16.msra.mxu1 %v3142_v39  ;;  %1878 = vmatprep.subr.bf16.mxu0 %v3143_v48  ;;  %v3194_v39 = vld [vmem:[#allocation2 + $0x200] ss:$8 sps:$4 sm:$0xff]   ;;  %v3199_v48 = vld [vmem:[#allocation2 + $0x2f4] ss:$8 sps:$4 sm:$0xff]  }
 0x1a0   :  { %1919 = vmatprep.subr.bf16.mxu1 %v3145_v44  ;;  %v3197_v44 = vld [vmem:[#allocation2 + $0x2f0] ss:$8 sps:$4 sm:$0xff]  }
 0x1a2   :  { %1879 = vmatpush2.bf16.msra.mxu0 %v3147_v58  ;;  %v3202_v58 = vld [vmem:[#allocation2 + $0x2e4] ss:$8 sps:$4 sm:$0xff]  }
 0x1a3   :  { %1920 = vmatpush2.bf16.msra.mxu1 %v3148_v54  ;;  %1880 = vmatprep.subr.bf16.mxu0 %v3149_v47  ;;  %v3200_v54 = vld [vmem:[#allocation2 + $0x2e0] ss:$8 sps:$4 sm:$0xff]   ;;  %v3205_v47 = vld [vmem:[#allocation2 + $0x2d4] ss:$8 sps:$4 sm:$0xff]  }
 0x1a4   :  { %1921 = vmatprep.subr.bf16.mxu1 %v3151_v41  ;;  %v3203_v41 = vld [vmem:[#allocation2 + $0x2d0] ss:$8 sps:$4 sm:$0xff]  }
 0x1a6   :  { %1881 = vmatpush2.bf16.msra.mxu0 %v3153_v37  ;;  %v3208_v37 = vld [vmem:[#allocation2 + $0x2c4] ss:$8 sps:$4 sm:$0xff]  }
 0x1a7   :  { %1922 = vmatpush2.bf16.msra.mxu1 %v3154_v32  ;;  %1882 = vmatprep.subr.bf16.mxu0 %v3155_v35  ;;  %v3206_v32 = vld [vmem:[#allocation2 + $0x2c0] ss:$8 sps:$4 sm:$0xff]   ;;  %v3211_v35 = vld [vmem:[#allocation2 + $0x2b4] ss:$8 sps:$4 sm:$0xff]  }
 0x1a8   :  { %1923 = vmatprep.subr.bf16.mxu1 %v3157_v46  ;;  %v3209_v46 = vld [vmem:[#allocation2 + $0x2b0] ss:$8 sps:$4 sm:$0xff]  }
 0x1aa   :  { %1883 = vmatpush2.bf16.msra.mxu0 %v3159_v62  ;;  %v3214_v62 = vld [vmem:[#allocation2 + $0x2a4] ss:$8 sps:$4 sm:$0xff]  }
 0x1ab   :  { %1924 = vmatpush2.bf16.msra.mxu1 %v3160_v34  ;;  %1884 = vmatprep.subr.bf16.mxu0 %v3161_v63  ;;  %v3212_v34 = vld [vmem:[#allocation2 + $0x2a0] ss:$8 sps:$4 sm:$0xff]   ;;  %v3217_v63 = vld [vmem:[#allocation2 + $0x294] ss:$8 sps:$4 sm:$0xff]  }
 0x1ac   :  { %1925 = vmatprep.subr.bf16.mxu1 %v3163_v43  ;;  %v3215_v43 = vld [vmem:[#allocation2 + $0x290] ss:$8 sps:$4 sm:$0xff]  }
 0x1ae   :  { %1885 = vmatpush2.bf16.msra.mxu0 %v3165_v17  ;;  %v3220_v17 = vld [vmem:[#allocation2 + $0x284] ss:$8 sps:$4 sm:$0xff]  }
 0x1af   :  { %1926 = vmatpush2.bf16.msra.mxu1 %v3166_v19  ;;  %1886 = vmatprep.subr.bf16.mxu0 %v3167_v49  ;;  %v3218_v19 = vld [vmem:[#allocation2 + $0x280] ss:$8 sps:$4 sm:$0xff]   ;;  %v1374_v49 = vpack.c.bf16 %v3717_v52, %v3717_v52 }
 0x1b0   :  { %1927 = vmatprep.subr.bf16.mxu1 %v3169_v18 }
 0x1b2   :  { %1887 = vmatpush2.bf16.msra.mxu0 %v3171_v45 }
 0x1b3   :  { %1928 = vmatpush2.bf16.msra.mxu1 %v3172_v51  ;;  %1938 = vmatprep.subr.bf16.mxu0 %v3175_v16 }
 0x1b5   :  { %1889 = vmatmul.mubr.bf16.vlgmr.msra.gmra.mxu0 %v1370_v20 }
 0x1b6   :  { %1930 = vmatmul.mubr.bf16.vlgmr.msra.gmra.mxu1 %v1372_v53  ;;  %1939 = vmatpush1.bf16.msra.mxu0 %v3173_v22 }
 0x1b7   :  { %1970 = vmatprep.mubr.bf16.mxu0 %v1375_v21  ;;  %1940 = vmatprep.subr.bf16.mxu0 %v3178_v23 }
 0x1ba   :  { %1941 = vmatpush1.bf16.msra.mxu0 %v3176_v33 }
 0x1bb   :  { %1942 = vmatprep.subr.bf16.mxu0 %v3181_v42 }
 0x1be   :  { %1943 = vmatpush1.bf16.msra.mxu0 %v3179_v61 }
 0x1bf   :  { %1944 = vmatprep.subr.bf16.mxu0 %v3184_v55 }
 0x1c2   :  { %1945 = vmatpush1.bf16.msra.mxu0 %v3182_v40 }
 0x1c3   :  { %1946 = vmatprep.subr.bf16.mxu0 %v3187_v50 }
 0x1c6   :  { %1947 = vmatpush1.bf16.msra.mxu0 %v3185_v57 }
 0x1c7   :  { %1948 = vmatprep.subr.bf16.mxu0 %v3190_v59 }
 0x1ca   :  { %1949 = vmatpush1.bf16.msra.mxu0 %v3188_v38 }
 0x1cb   :  { %1950 = vmatprep.subr.bf16.mxu0 %v3193_v60 }
 0x1ce   :  { %1951 = vmatpush1.bf16.msra.mxu0 %v3191_v36  ;;  %v2805_v36 = vld [vmem:[%s3841_s3] ss:$0 sm:$0xff] }
 0x1cf   :  { %1952 = vmatprep.subr.bf16.mxu0 %v3196_v56 }
 0x1d2   :  { %1953 = vmatpush1.bf16.msra.mxu0 %v3194_v39 }
 0x1d3   :  { %1954 = vmatprep.subr.bf16.mxu0 %v3199_v48 }
 0x1d6   :  { %1955 = vmatpush2.bf16.msra.mxu0 %v3197_v44 }
 0x1d7   :  { %1956 = vmatprep.subr.bf16.mxu0 %v3202_v58 }
 0x1da   :  { %1957 = vmatpush2.bf16.msra.mxu0 %v3200_v54 }
 0x1db   :  { %1958 = vmatprep.subr.bf16.mxu0 %v3205_v47 }
 0x1de   :  { %1959 = vmatpush2.bf16.msra.mxu0 %v3203_v41 }
 0x1df   :  { %1960 = vmatprep.subr.bf16.mxu0 %v3208_v37  ;;  %v2821_v37 = vcombine.high %v3462_v14, %v3467_v15 }
 0x1e2   :  { %1961 = vmatpush2.bf16.msra.mxu0 %v3206_v32  ;;  %v2820_v32 = vcombine.low %v3462_v14, %v3467_v15 }
 0x1e3   :  { %1962 = vmatprep.subr.bf16.mxu0 %v3211_v35  ;;  %v2819_v35 = vcombine.high %v3452_v12, %v3457_v13 }
 0x1e6   :  { %1963 = vmatpush2.bf16.msra.mxu0 %v3209_v46 }
 0x1e7   :  { %1964 = vmatprep.subr.bf16.mxu0 %v3214_v62 }
 0x1ea   :  { %1965 = vmatpush2.bf16.msra.mxu0 %v3212_v34 }
 0x1eb   :  { %1966 = vmatprep.subr.bf16.mxu0 %v3217_v63 }
 0x1ee   :  { %1967 = vmatpush2.bf16.msra.mxu0 %v3215_v43 }
 0x1ef   :  { %1968 = vmatprep.subr.bf16.mxu0 %v3220_v17 }
 0x1f2   :  { %1969 = vmatpush2.bf16.msra.mxu0 %v3218_v19 }
 0x1f5   :  { %1971 = vmatmul.mubr.bf16.vlgmr.msra.gmra.mxu0 %v1374_v49 }
 0x275   :  { %v1890_v18 = vpop.f32.mrf.mxu0 }
 0x276   :  { %v1931_v45 = vpop.f32.mrf.mxu1 }
 0x277   :  { %v1932_v51 = vadd.f32 %v1931_v45, %v1890_v18  ;;  %v1892_v16 = vpop.f32.mrf.mxu0 }
 0x278   :  { %v1933_v20 = vpop.f32.mrf.mxu1 }
 0x279   :  { %v1894_v53 = vpop.f32.mrf.mxu0  ;;  %v1934_v42 = vadd.f32 %v1933_v20, %v1892_v16 }
 0x27a   :  { %v1935_v22 = vpop.f32.mrf.mxu1 }
 0x27b   :  { %v1895_v21 = vpop.f32.mrf.mxu0 }
 0x27c   :  { %v1936_v23 = vpop.f32.mrf.mxu1 }
 0x2b5   :  { %v1972_v33 = vpop.f32.mrf.mxu0 }
 0x2b6   :  { %v1973_v61 = vadd.f32 %v1972_v33, %v1932_v51 }
 0x2b7   :  { %v1974_v55 = vpop.f32.mrf.mxu0 }
 0x2b8   :  { %v1981_v40 = vrot.slane %v1973_v61, 4  ;;  %v1975_v50 = vadd.f32 %v1974_v55, %v1934_v42 }
 0x2b9   :  { %v1976_v57 = vpop.f32.mrf.mxu0 }
 0x2ba   :  { %v1982_v59 = vrot.slane %v1975_v50, 4  ;;  %v1985_v38 = vmax.f32 %v1973_v61, %v1981_v40 }
 0x2bb   :  { %v1977_v52 = vpop.f32.mrf.mxu0 }
 0x2bc   :  { %v1986_v60 = vmax.f32 %v1975_v50, %v1982_v59 }
 0x2be   :  { %v1987_v56 = vmax.f32 %v1985_v38, %v1986_v60 }
 0x2c0   :  { %v1995_v39 = vadd.f32 %v2805_v36, %v1987_v56 }
 0x2c2   :  { %vm1996_vm13 = vcmp.ge.f32.partialorder %v1995_v39, 0.0  ;;  %v1997_v48 = vmul.f32 0.1, %v1995_v39 }
 0x2c4   :  { %v1998_v44 = vsel %vm1996_vm13, %v1995_v39, %v1997_v48 }
 0x2c5   :  { %v2000_v58 = vrot.slane %v1998_v44, 1 }
 0x2c7   :  { %v2002_v54 = vrot.slane %v2000_v58, 1  ;;  %v3743_v47 = vsel %vm306_vm2, %v1998_v44, %v2000_v58 }
 0x2c9   :  { %v2005_v41 = vsel %vm306_vm2, %v2000_v58, %v2002_v54 }
 0x2ca   :  { %3309 = dma.done.wait [#allocation6 + $0x1], 4096 }
 0x2cb   :  { %3310 = vsyncadd [#allocation6 + $0x1], 4294963200  ;;  %2218 = vmatprep.subr.bf16.mxu1 %v2821_v37  ;;  %v2818_v46 = vcombine.low %v3452_v12, %v3457_v13  ;;  %v2817_v62 = vcombine.high %v3442_v10, %v3447_v11  ;;  %v2816_v34 = vcombine.low %v3442_v10, %v3447_v11  ;;  %v2815_v15 = vcombine.high %v3432_v8, %v3437_v9  ;;  %v3873_v17 = vld [vmem:[#allocation29_spill] sm:$0xff]  ;;  %v3874_v19 = vld [vmem:[#allocation28_spill] sm:$0xff] }
 0x2cc   :  { %2219 = vmatpush1.bf16.msra.mxu1 %v2820_v32  ;;  %vm3760_vm14 = vmpackc.low %vm318_vm5, %vm318_vm5  ;;  %v2839_v63 = vpack.c.bf16 %v2005_v41, %v2005_v41  ;;  %v2814_v12 = vcombine.low %v3432_v8, %v3437_v9  ;;  %v2813_v10 = vcombine.high %v3422_v6, %v3427_v7  ;;  %v2812_v11 = vcombine.low %v3422_v6, %v3427_v7  ;;  %v3875_v49 = vld [vmem:[#allocation27_spill] sm:$0xff]  ;;  %v3876_v18 = vld [vmem:[#allocation26_spill] sm:$0xff] }
 0x2cd   :  { %2220 = vmatprep.subr.bf16.mxu1 %v2819_v35  ;;  %v2811_v13 = vcombine.high %v3412_v4, %v3417_v5  ;;  %v2810_v43 = vcombine.low %v3412_v4, %v3417_v5  ;;  %v2809_v8 = vcombine.high %v3402_v2, %v3407_v3  ;;  %v2808_v9 = vcombine.low %v3402_v2, %v3407_v3  ;;  %v3877_v45 = vld [vmem:[#allocation25_spill] sm:$0xff]  ;;  %v3878_v51 = vld [vmem:[#allocation24_spill] sm:$0xff]  ;;  %v3879_v16 = vld [vmem:[#allocation23_spill] sm:$0xff] }
 0x2ce   :  { %2840 = vmatprep.mubr.msk.bf16.mxu1 %vm3760_vm14, %v2839_v63  ;;  %v2807_v6 = vcombine.high %v3392_v0, %v3397_v1  ;;  %v2806_v7 = vcombine.low %v3392_v0, %v3397_v1  ;;  %v2837_v4 = vcombine.high %v3542_v30, %v3547_v31  ;;  %v2836_v5 = vcombine.low %v3542_v30, %v3547_v31  ;;  %v3880_v20 = vld [vmem:[#allocation22_spill] sm:$0xff] }
 0x2cf   :  { %v2835_v2 = vcombine.high %v3532_v28, %v3537_v29  ;;  %v2834_v3 = vcombine.low %v3532_v28, %v3537_v29  ;;  %v2833_v0 = vcombine.high %v3522_v26, %v3527_v27  ;;  %v2832_v1 = vcombine.low %v3522_v26, %v3527_v27  ;;  %v2046_v23 = vld [vmem:[%s3842_s4] sm:$0x3] }
 0x2d0   :  { %2221 = vmatpush1.bf16.msra.mxu1 %v2818_v46  ;;  %v2831_v30 = vcombine.high %v3512_v24, %v3517_v25  ;;  %v2830_v31 = vcombine.low %v3512_v24, %v3517_v25  ;;  %v2829_v28 = vcombine.high %v3874_v19, %v3873_v17  ;;  %v2828_v29 = vcombine.low %v3874_v19, %v3873_v17  ;;  %v3881_v33 = vld [vmem:[#allocation30_spill] sm:$0xff] }
 0x2d1   :  { %2222 = vmatprep.subr.bf16.mxu1 %v2817_v62  ;;  %v2827_v26 = vcombine.high %v3876_v18, %v3875_v49  ;;  %v2826_v27 = vcombine.low %v3876_v18, %v3875_v49  ;;  %v2825_v24 = vcombine.high %v3878_v51, %v3877_v45  ;;  %v2824_v25 = vcombine.low %v3878_v51, %v3877_v45 }
 0x2d2   :  { %v2823_v53 = vcombine.high %v3880_v20, %v3879_v16  ;;  %v2822_v22 = vcombine.low %v3880_v20, %v3879_v16  ;;  %v2842_v21 = vpack.c.bf16 %v3743_v47, %v3743_v47  ;;  %v3882_v42 = vsub.s32 0, %v3881_v33 }
 0x2d3   :  { %v3883_v55 = vsub.s32 1, %v3881_v33 }
 0x2d4   :  { %2223 = vmatpush1.bf16.msra.mxu1 %v2816_v34  ;;  %v2051_v61 = vrot.slane %v2046_v23, %v3882_v42 }
 0x2d5   :  { %2224 = vmatprep.subr.bf16.mxu1 %v2815_v15  ;;  %v2055_v40 = vrot.slane %v2046_v23, %v3883_v55 }
 0x2d8   :  { %2225 = vmatpush1.bf16.msra.mxu1 %v2814_v12 }
 0x2d9   :  { %2226 = vmatprep.subr.bf16.mxu1 %v2813_v10 }
 0x2dc   :  { %2227 = vmatpush1.bf16.msra.mxu1 %v2812_v11 }
 0x2dd   :  { %2228 = vmatprep.subr.bf16.mxu1 %v2811_v13 }
 0x2e0   :  { %2229 = vmatpush1.bf16.msra.mxu1 %v2810_v43 }
 0x2e1   :  { %2230 = vmatprep.subr.bf16.mxu1 %v2809_v8 }
 0x2e4   :  { %2231 = vmatpush1.bf16.msra.mxu1 %v2808_v9 }
 0x2e5   :  { %2232 = vmatprep.subr.bf16.mxu1 %v2807_v6 }
 0x2e8   :  { %2233 = vmatpush1.bf16.msra.mxu1 %v2806_v7 }
 0x2e9   :  { %2234 = vmatprep.subr.bf16.mxu1 %v2837_v4 }
 0x2ec   :  { %2235 = vmatpush2.bf16.msra.mxu1 %v2836_v5 }
 0x2ed   :  { %2236 = vmatprep.subr.bf16.mxu1 %v2835_v2 }
 0x2f0   :  { %2237 = vmatpush2.bf16.msra.mxu1 %v2834_v3 }
 0x2f1   :  { %2238 = vmatprep.subr.bf16.mxu1 %v2833_v0 }
 0x2f4   :  { %2239 = vmatpush2.bf16.msra.mxu1 %v2832_v1 }
 0x2f5   :  { %2240 = vmatprep.subr.bf16.mxu1 %v2831_v30 }
 0x2f8   :  { %2241 = vmatpush2.bf16.msra.mxu1 %v2830_v31 }
 0x2f9   :  { %2242 = vmatprep.subr.bf16.mxu1 %v2829_v28 }
 0x2fc   :  { %2243 = vmatpush2.bf16.msra.mxu1 %v2828_v29 }
 0x2fd   :  { %2244 = vmatprep.subr.bf16.mxu1 %v2827_v26 }
 0x300   :  { %2245 = vmatpush2.bf16.msra.mxu1 %v2826_v27 }
 0x301   :  { %2246 = vmatprep.subr.bf16.mxu1 %v2825_v24 }
 0x304   :  { %2247 = vmatpush2.bf16.msra.mxu1 %v2824_v25 }
 0x305   :  { %2248 = vmatprep.subr.bf16.mxu1 %v2823_v53 }
 0x308   :  { %2249 = vmatpush2.bf16.msra.mxu1 %v2822_v22 }
 0x30b   :  { %2843 = vmatmul.mubr.msk.bf16.vlgmr.msra.gmra.mxu1 %vm3760_vm14, %v2842_v21 }
 0x3cb   :  { %v2252_v50 = vpop.f32.mrf.mxu1 }
 0x3cc   :  { %v2253_v57 = vadd.f32 %v2252_v50, %v2051_v61 }
 0x3cd   :  { %v2254_v59 = vpop.f32.mrf.mxu1 }
 0x3ce   :  { %vm2259_vm15 = vcmp.ge.f32.partialorder %v2253_v57, 0.0  ;;  %v2261_v52 = vmul.f32 0.1, %v2253_v57  ;;  %v2255_v38 = vadd.f32 %v2254_v59, %v2055_v40 }
 0x3cf   :  { %v2256_v60 = vpop.f32.mrf.mxu1 }
 0x3d0   :  { %v2263_v36 = vsel %vm2259_vm15, %v2253_v57, %v2261_v52  ;;  %vm2260_vm0 = vcmp.ge.f32.partialorder %v2255_v38, 0.0  ;;  %v2262_v56 = vmul.f32 0.1, %v2255_v38 }
 0x3d1   :  { %v2257_v39 = vpop.f32.mrf.mxu1 }
 0x3d2   :  { %v2264_v48 = vsel %vm2260_vm0, %v2255_v38, %v2262_v56 }
 0x3d3   :  { %3311 = dma.done.wait [#allocation6 + $0x2], 2048 }
 0x3d4   :  { %3312 = vsyncadd [#allocation6 + $0x2], 4294965248  ;;  %v2301_v44 = vpack.c.bf16 %v2264_v48, %v2264_v48  ;;  %v3221_v58 = vld [vmem:[#allocation4 + $0x78] sm:$0xff]   ;;  %v3223_v47 = vld [vmem:[#allocation4 + $0x70] sm:$0xff]   ;;  %v2300_v13 = vpack.c.bf16 %v2263_v36, %v2263_v36 }
 0x3d5   :  { %v3222_v54 = vld [vmem:[#allocation4 + $0x38] sm:$0xff]   ;;  %2874 = vmatprep.subr.bf16.mxu0 %v3221_v58  ;;  %v3224_v41 = vld [vmem:[#allocation4 + $0x30] sm:$0xff]   ;;  %v3225_v37 = vld [vmem:[#allocation4 + $0x68] sm:$0xff]  }
 0x3d6   :  { %2437 = vmatprep.mubr.bf16.mxu0 %v2301_v44  ;;  %2875 = vmatpush3.bf16.msra.mxu0 %v3222_v54  ;;  %v3226_v32 = vld [vmem:[#allocation4 + $0x28] sm:$0xff]   ;;  %v3227_v35 = vld [vmem:[#allocation4 + $0x60] sm:$0xff]   ;;  %v3229_v62 = vld [vmem:[#allocation4 + $0x58] sm:$0xff]  }
 0x3d7   :  { %2876 = vmatprep.subr.bf16.mxu0 %v3223_v47  ;;  %v3228_v46 = vld [vmem:[#allocation4 + $0x20] sm:$0xff]   ;;  %v3230_v34 = vld [vmem:[#allocation4 + $0x18] sm:$0xff]   ;;  %v3231_v14 = vld [vmem:[#allocation4 + $0x50] sm:$0xff]  }
 0x3d8   :  { %v3232_v15 = vld [vmem:[#allocation4 + $0x10] sm:$0xff]   ;;  %v3233_v63 = vld [vmem:[#allocation4 + $0x48] sm:$0xff]   ;;  %v3235_v10 = vld [vmem:[#allocation4 + $0x40] sm:$0xff]  }
 0x3d9   :  { %v3234_v12 = vld [vmem:[#allocation4 + $0x8] sm:$0xff]   ;;  %v3236_v11 = vld [vmem:[#allocation4] sm:$0xff]  }
 0x3da   :  { %2877 = vmatpush3.bf16.msra.mxu0 %v3224_v41  ;;  %v2844_v8 = vld [vmem:[%s3843_s5] ss:$0 sm:$0xff] }
 0x3db   :  { %2878 = vmatprep.subr.bf16.mxu0 %v3225_v37 }
 0x3de   :  { %2879 = vmatpush3.bf16.msra.mxu0 %v3226_v32 }
 0x3df   :  { %2880 = vmatprep.subr.bf16.mxu0 %v3227_v35 }
 0x3e2   :  { %2881 = vmatpush3.bf16.msra.mxu0 %v3228_v46 }
 0x3e3   :  { %2882 = vmatprep.subr.bf16.mxu0 %v3229_v62 }
 0x3e6   :  { %2883 = vmatpush3.bf16.msra.mxu0 %v3230_v34 }
 0x3e7   :  { %2884 = vmatprep.subr.bf16.mxu0 %v3231_v14 }
 0x3ea   :  { %2885 = vmatpush3.bf16.msra.mxu0 %v3232_v15 }
 0x3eb   :  { %2886 = vmatprep.subr.bf16.mxu0 %v3233_v63 }
 0x3ee   :  { %2887 = vmatpush3.bf16.msra.mxu0 %v3234_v12 }
 0x3ef   :  { %2888 = vmatprep.subr.bf16.mxu0 %v3235_v10 }
 0x3f2   :  { %2889 = vmatpush3.bf16.msra.mxu0 %v3236_v11 }
 0x3f5   :  { %2438 = vmatmul.mubr.bf16.vlgmr.msra.gmra.mxu0 %v2300_v13 }
 0x4b5   :  { %v2890_v43 = vpop.f32.mrf.mxu0 }
 0x4b7   :  { %v2891_v9 = vpop.f32.mrf.mxu0 }
 0x4b8   :  { %v2892_v6 = vadd.f32 %v2891_v9, %v2890_v43 }
 0x4b9   :  { %v2893_v7 = vpop.f32.mrf.mxu0 }
 0x4ba   :  { %v2440_v4 = vadd.f32 %v2892_v6, %v2844_v8 }
 0x4bb   :  { %v2894_v5 = vpop.f32.mrf.mxu0 }
 0x4bc   :  { %vm2445_vm1 = vcmp.ge.f32.partialorder %v2440_v4, 0.0  ;;  %v2446_v2 = vmul.f32 0.1, %v2440_v4 }
 0x4be   :  { %v2447_v3 = vsel %vm2445_vm1, %v2440_v4, %v2446_v2 }
 0x4bf   :  { %3313 = dma.done.wait [#allocation6 + $0x3], 1024 }
 0x4c0   :  { %3314 = vsyncadd [#allocation6 + $0x3], 4294966272  ;;  %v3321_v0 = vmov 0.0   ;;  %vm3322_vm2 = vmmov 0   ;;  %v3237_v1 = vld [vmem:[#allocation5 + $0x38] sm:$0xff]   ;;  %v3238_v30 = vld [vmem:[#allocation5 + $0x30] sm:$0xff]   ;;  %v2468_v18 = vpack.c.bf16 %v2447_v3, %v2447_v3 }
 0x4c1   :  { %2905 = vmatprep.subr.bf16.mxu1 %v3321_v0  ;;  %2921 = vmatprep.mubr.msk.bf16.mxu1 %vm3322_vm2, %v3321_v0  ;;  %v3239_v31 = vld [vmem:[#allocation5 + $0x28] sm:$0xff]   ;;  %v3240_v17 = vld [vmem:[#allocation5 + $0x20] sm:$0xff]   ;;  %v3241_v19 = vld [vmem:[#allocation5 + $0x18] sm:$0xff]  }
 0x4c2   :  { %2906 = vmatpush3.bf16.msra.mxu1 %v3237_v1  ;;  %v3242_v28 = vld [vmem:[#allocation5 + $0x10] sm:$0xff]   ;;  %v3243_v29 = vld [vmem:[#allocation5 + $0x8] sm:$0xff]   ;;  %v3244_v49 = vld [vmem:[#allocation5] sm:$0xff]  }
 0x4c3   :  { %2907 = vmatprep.subr.bf16.mxu1 %v3321_v0  ;;  %v2861_v26 = vld [vmem:[%s3844_s6] ss:$0 sm:$0xff] }
 0x4c6   :  { %2908 = vmatpush3.bf16.msra.mxu1 %v3238_v30 }
 0x4c7   :  { %2909 = vmatprep.subr.bf16.mxu1 %v3321_v0 }
 0x4ca   :  { %2910 = vmatpush3.bf16.msra.mxu1 %v3239_v31 }
 0x4cb   :  { %2911 = vmatprep.subr.bf16.mxu1 %v3321_v0 }
 0x4ce   :  { %2912 = vmatpush3.bf16.msra.mxu1 %v3240_v17 }
 0x4cf   :  { %2913 = vmatprep.subr.bf16.mxu1 %v3321_v0 }
 0x4d2   :  { %2914 = vmatpush3.bf16.msra.mxu1 %v3241_v19 }
 0x4d3   :  { %2915 = vmatprep.subr.bf16.mxu1 %v3321_v0 }
 0x4d6   :  { %2916 = vmatpush3.bf16.msra.mxu1 %v3242_v28 }
 0x4d7   :  { %2917 = vmatprep.subr.bf16.mxu1 %v3321_v0 }
 0x4da   :  { %2918 = vmatpush3.bf16.msra.mxu1 %v3243_v29 }
 0x4db   :  { %2919 = vmatprep.subr.bf16.mxu1 %v3321_v0 }
 0x4de   :  { %2920 = vmatpush3.bf16.msra.mxu1 %v3244_v49 }
 0x4e1   :  { %2922 = vmatmul.mubr.bf16.vlgmr.msra.gmra.mxu1 %v2468_v18 }
 0x5a1   :  { %v2558_v27 = vpop.f32.mrf.mxu1 }
 0x5a2   :  { %v2559_v45 = vadd.f32 %v2861_v26, %v2558_v27 }
 0x5a3   :  { %v2923_v51 = vpop.f32.mrf.mxu1 }
 0x5a4   :  { %2564 = vst [vmem:[%s3849_s11] sm:$0xff] %v2559_v45 }
 0x5a5   :  { %v2561_v24 = vpop.f32.mrf.mxu1 }
 0x5a7   :  { %v2924_v25 = vpop.f32.mrf.mxu1 }
 0x5a8   :  { %2569 = vsyncpa [#allocation8], 1 }
 0x5a9   :  { %2570 = vsyncmov [#allocation6] }
 0x5ac   :  { %s2571_s16 = vpop.sfrf %2570 }
 0x5ad   :  { %p2870_p1 = scmp.ne.s32.totalorder %s2571_s16, 0 }
 0x5af   :  { %2575 = shalt.err (%p2870_p1)  }
 0x5b0   :  { %2577 = vsyncmov [#allocation6 + $0x1] }
 0x5b3   :  { %s2578_s7 = vpop.sfrf %2577 }
 0x5b4   :  { %p2871_p2 = scmp.ne.s32.totalorder %s2578_s7, 0 }
 0x5b6   :  { %2582 = shalt.err (%p2871_p2)  }
 0x5b7   :  { %2584 = vsyncmov [#allocation6 + $0x2] }
 0x5ba   :  { %s2585_s6 = vpop.sfrf %2584 }
 0x5bb   :  { %p2872_p3 = scmp.ne.s32.totalorder %s2585_s6, 0 }
 0x5bd   :  { %2589 = shalt.err (%p2872_p3)  }
 0x5be   :  { %2591 = vsyncmov [#allocation6 + $0x3] }
 0x5c1   :  { %s2592_s8 = vpop.sfrf %2591 }
 0x5c2   :  { %p2873_p4 = scmp.ne.s32.totalorder %s2592_s8, 0 }
 0x5c4   :  { %2596 = shalt.err (%p2873_p4)  }

</bundles_post_ra>
